<compile_context>
chip_gen: v5e
topology: v5e:2x2
jax: 0.10.0
libtpu: 0.0.40
codegen_flags: <defaults>
</compile_context>

<pallas_src>
import functools
import math

import jax
import jax.numpy as jnp
from jax import lax
from jax.experimental import pallas as pl
from jax.experimental.pallas import tpu as pltpu

LANE = 128        # classifier logits padded to a lane-dense width
NEG_INF = -1e30

# Softmax denominator: the approximate reciprocal runs on the EUP (free slot)
# but is ~1e-3 relative.  Set False for an exact divide if accuracy matters.
APPROX_SOFTMAX_RECIP = True


# ----------------------------- kernel helpers -------------------------------


def _layernorm(x, w, b, eps=1e-5):
    mu = jnp.mean(x, axis=-1, keepdims=True)
    var = jnp.mean((x - mu) ** 2, axis=-1, keepdims=True)
    return (x - mu) * lax.rsqrt(var + eps) * w + b


def _erf(z):
    # Abramowitz & Stegun 7.1.26 polynomial (max abs err ~1.5e-7).  Avoids
    # relying on an erf lowering inside Mosaic; uses only exp / mul / add.
    p = 0.3275911
    a1, a2, a3, a4, a5 = (0.254829592, -0.284496736, 1.421413741,
                          -1.453152027, 1.061405429)
    az = jnp.abs(z)
    t = 1.0 / (1.0 + p * az)
    poly = ((((a5 * t + a4) * t + a3) * t + a2) * t + a1) * t
    y = 1.0 - poly * jnp.exp(-az * az)
    return jnp.where(z >= 0, y, -y)


def _gelu_exact(x):
    # torch.nn.GELU() default: exact erf-based GELU.
    return 0.5 * x * (1.0 + _erf(x * (1.0 / math.sqrt(2.0))))


# ------------------------------- fused kernel -------------------------------


def gpt_kernel(x_hbm, lnp_ref, w_qkv_ref, b_qkv_ref, w_o_ref,
               w_fc_ref, b_fc_ref, w_pr_ref, lnf_ref, w_s_ref, b_s_ref,
               logits_ref,
               h_ref, att_ref, copy_sem,
               *, seq_len, head_dim):
    """One grid step == one transformer layer for one batch shard.

    h_ref: VMEM residual stream (Mh, C) f32, resident across the layer axis.
    att_ref: VMEM head-major assembly buffer for attention outputs (Mh, C).
    """
    split = pl.program_id(0)
    layer = pl.program_id(1)
    n_layer = pl.num_programs(1)
    f32, bf16 = jnp.float32, jnp.bfloat16

    Mh, C = h_ref.shape
    T = seq_len
    Bh = Mh // T
    hd = head_dim
    NG = w_qkv_ref.shape[1]            # number of head groups
    GW = w_qkv_ref.shape[3] // 3       # group width = G * hd
    G = GW // hd                       # heads per group
    NC = w_fc_ref.shape[1]             # MLP hidden-dim chunks
    scale = 1.0 / math.sqrt(hd)

    # Layer 0 of each batch shard: DMA this shard's embedded tokens from HBM
    # into the VMEM residual stream (x never occupies a second VMEM window
    # for layers > 0).
    @pl.when(layer == 0)
    def _init():
        start = split * Mh
        if Mh % 8 == 0:
            start = pl.multiple_of(start, 8)
        cp = pltpu.make_async_copy(x_hbm.at[pl.ds(start, Mh), :], h_ref,
                                   copy_sem)
        cp.start()
        cp.wait()

    x = h_ref[...]                                  # (Mh, C) f32
    lnp = lnp_ref[0]                                # (6, C): ln1_w/b, ln2_w/b, b_o, b_pr

    # Causal mask built in-kernel (no (T,T) HBM traffic / VMEM window).
    rows = lax.broadcasted_iota(jnp.int32, (T, T), 0)
    cols = lax.broadcasted_iota(jnp.int32, (T, T), 1)
    causal = (cols <= rows)[None]                   # (1, T, T)

    # ------------------------------ attention ------------------------------
    xn = _layernorm(x, lnp[0:1], lnp[1:2]).astype(bf16)
    for g in range(NG):                             # head groups (>=128 lanes)
        qkv = (jnp.dot(xn, w_qkv_ref[0, g], preferred_element_type=f32)
               + b_qkv_ref[0, g])                   # (Mh, 3*GW), one MXU pass
        q = qkv[:, 0:GW] * scale                    # fold 1/sqrt(hd) into q
        k = qkv[:, GW:2 * GW]
        v = qkv[:, 2 * GW:3 * GW]
        for h in range(G):                          # heads inside the group
            lo = h * hd
            qh = q[:, lo:lo + hd].reshape(Bh, T, hd).astype(bf16)
            kh = k[:, lo:lo + hd].reshape(Bh, T, hd).astype(bf16)
            vh = v[:, lo:lo + hd].reshape(Bh, T, hd).astype(bf16)
            s = jnp.einsum("btd,bsd->bts", qh, kh,
                           preferred_element_type=f32)       # (Bh, T, T)
            s = jnp.where(causal, s, NEG_INF)
            s = s - jnp.max(s, axis=-1, keepdims=True)
            ps = jnp.exp(s)
            den = jnp.sum(ps, axis=-1, keepdims=True)
            if APPROX_SOFTMAX_RECIP:
                ps = ps * pl.reciprocal(den, approx=True)     # EUP slot
            else:
                ps = ps / den
            oh = jnp.einsum("bts,bsd->btd", ps.astype(bf16), vh,
                            preferred_element_type=f32)       # (Bh, T, hd)
            col = g * GW + lo                       # head-major assembly
            att_ref[:, col:col + hd] = oh.reshape(Mh, hd)
    # single full-width output projection: (Mh, C) @ (C, C)
    y = jnp.dot(att_ref[...].astype(bf16), w_o_ref[0],
                preferred_element_type=f32)
    x = x + y + lnp[4:5]

    # --------------------------------- MLP ---------------------------------
    # Hidden dim processed in chunks; the full (Mh, 4C) tensor is never live.
    xn2 = _layernorm(x, lnp[2:3], lnp[3:4]).astype(bf16)
    acc = jnp.zeros((Mh, C), f32)
    for c in range(NC):
        h1 = (jnp.dot(xn2, w_fc_ref[0, c], preferred_element_type=f32)
              + b_fc_ref[0, c])
        h1 = _gelu_exact(h1)
        acc = acc + jnp.dot(h1.astype(bf16), w_pr_ref[0, c],
                            preferred_element_type=f32)
    x = x + acc + lnp[5:6]
    h_ref[...] = x

    # --------- final LayerNorm + sentiment head (last token only) ----------
    @pl.when(layer == n_layer - 1)
    def _final():
        last = x.reshape(Bh, T, C)[:, T - 1, :]                 # (Bh, C)
        lnf = lnf_ref[...]
        xf = _layernorm(last, lnf[0:1], lnf[1:2])
        logits_ref[0] = (jnp.dot(xf.astype(bf16), w_s_ref[...],
                                 preferred_element_type=f32)
                         + b_s_ref[...])


# --------------------------------- wrapper ----------------------------------


def _vmem_limit_bytes():
    # Leave headroom below physical VMEM (v7x: 64 MiB/core, v5e/v6e: 128 MiB).
    try:
        cap = int(pltpu.get_tpu_info().vmem_capacity_bytes)
    except Exception:
        return 48 * 1024 * 1024
    return int(min(cap * 3 // 4, 100 * 1024 * 1024))


def _layer_spec(shape):
    rest = (0,) * (len(shape) - 1)
    return pl.BlockSpec((1,) + tuple(shape[1:]), lambda b, l: (l,) + rest)


def _const_spec(shape):
    zeros = (0,) * len(shape)
    return pl.BlockSpec(tuple(shape), lambda b, l: zeros)


def gpt_forward(idx, kp, *, n_head, num_classes, batch_split=1):
    """idx: (B, T) int32 token ids -> sentiment logits (B, num_classes).

    batch_split > 1 adds a leading "parallel" grid axis (useful on v7x's two
    TensorCores); batch_split=1 keeps a single shard.
    """
    B, T = idx.shape
    C = kp["wte"].shape[1]
    L = kp["lnp"].shape[0]
    PAD = kp["w_s"].shape[1]
    hd = C // n_head
    assert B % batch_split == 0
    Bh = B // batch_split
    Mh = Bh * T
    M = B * T

    # Embedding gather + positional add in plain JAX.
    # TODO(synk): dropout layers are identity here (eval-mode semantics).
    tok = jnp.take(kp["wte"], idx, axis=0)                     # (B, T, C)
    x = (tok + kp["wpe"][:T][None]).reshape(M, C).astype(jnp.float32)

    kernel = functools.partial(gpt_kernel, seq_len=T, head_dim=hd)

    logits = pl.pallas_call(
        kernel,
        out_shape=jax.ShapeDtypeStruct((batch_split, Bh, PAD), jnp.float32),
        grid=(batch_split, L),
        in_specs=[
            pl.BlockSpec(memory_space=pl.ANY),      # x stays in HBM; DMA'd once
            _layer_spec(kp["lnp"].shape),
            _layer_spec(kp["w_qkv"].shape),
            _layer_spec(kp["b_qkv"].shape),
            _layer_spec(kp["w_o"].shape),
            _layer_spec(kp["w_fc"].shape),
            _layer_spec(kp["b_fc"].shape),
            _layer_spec(kp["w_pr"].shape),
            _const_spec(kp["lnf"].shape),
            _const_spec(kp["w_s"].shape),
            _const_spec(kp["b_s"].shape),
        ],
        out_specs=pl.BlockSpec((1, Bh, PAD), lambda b, l: (b, 0, 0)),
        scratch_shapes=[
            pltpu.VMEM((Mh, C), jnp.float32),       # residual stream
            pltpu.VMEM((Mh, C), jnp.float32),       # attention head assembly
            pltpu.SemaphoreType.DMA,                # x -> residual DMA
        ],
        compiler_params=pltpu.CompilerParams(
            dimension_semantics=("parallel", "arbitrary"),
            vmem_limit_bytes=_vmem_limit_bytes()),
    )(x, kp["lnp"], kp["w_qkv"], kp["b_qkv"], kp["w_o"],
      kp["w_fc"], kp["b_fc"], kp["w_pr"], kp["lnf"], kp["w_s"], kp["b_s"])

    return logits.reshape(B, PAD)[:, :num_classes]


# ------------------------- host-side param packing --------------------------


def prepare_params(p, *, n_head, pad_classes=LANE, mlp_chunk=1024):
    """Repack canonical (torch-layout) params into the kernel's layout."""
    L, C = p["ln1_w"].shape
    H = n_head
    assert C % H == 0
    hd = C // H
    bf16, f32 = jnp.bfloat16, jnp.float32

    # Head grouping: G heads per group so the fused QKV matmul width G*hd
    # reaches a 128-lane multiple when possible (and GW divides C).
    gmax = max(1, 128 // hd) if hd < 128 else 1
    G = 1
    for d in range(min(H, gmax), 0, -1):
        if H % d == 0:
            G = d
            break
    GW = G * hd
    NG = H // G

    # MLP hidden-dim chunking: never materialize the full (M, 4C) hidden.
    hidden = 4 * C
    NC = max(1, hidden // mlp_chunk)
    while hidden % NC:
        NC += 1
    CH = hidden // NC

    def grp_cols(w):                                # (L, C, C) -> (L, NG, C, GW)
        return w.reshape(L, C, NG, GW).transpose(0, 2, 1, 3)

    w_qkv = jnp.concatenate(
        [grp_cols(p["w_q"]), grp_cols(p["w_k"]), grp_cols(p["w_v"])],
        axis=-1).astype(bf16)                                  # (L, NG, C, 3GW)
    b_qkv = jnp.concatenate(
        [p["b_q"].reshape(L, NG, 1, GW),
         p["b_k"].reshape(L, NG, 1, GW),
         p["b_v"].reshape(L, NG, 1, GW)], axis=-1).astype(f32)  # (L, NG, 1, 3GW)

    w_fc = (p["w_fc"].reshape(L, C, NC, CH)
            .transpose(0, 2, 1, 3).astype(bf16))               # (L, NC, C, CH)
    b_fc = p["b_fc"].reshape(L, NC, 1, CH).astype(f32)
    w_pr = p["w_pr"].reshape(L, NC, CH, C).astype(bf16)        # (L, NC, CH, C)

    # Small f32 per-layer vectors packed into one (L, 6, C) blob:
    # rows = [ln1_w, ln1_b, ln2_w, ln2_b, b_o, b_pr]  (fewer DMA descriptors).
    lnp = jnp.stack([p["ln1_w"], p["ln1_b"], p["ln2_w"], p["ln2_b"],
                     p["b_o"], p["b_pr"]], axis=1).astype(f32)
    lnf = jnp.stack([p["lnf_w"], p["lnf_b"]], axis=0).astype(f32)   # (2, C)

    n_cls = p["w_s"].shape[1]
    w_s = jnp.zeros((C, pad_classes), f32).at[:, :n_cls].set(p["w_s"])
    b_s = jnp.zeros((1, pad_classes), f32).at[0, :n_cls].set(p["b_s"])

    return {
        "wte": p["wte"].astype(f32), "wpe": p["wpe"].astype(f32),
        "lnp": lnp, "w_qkv": w_qkv, "b_qkv": b_qkv,
        "w_o": p["w_o"].astype(bf16),
        "w_fc": w_fc, "b_fc": b_fc, "w_pr": w_pr,
        "lnf": lnf, "w_s": w_s.astype(bf16), "b_s": b_s,
    }


# --------------------------- pure-JAX reference ------------------------------


def gpt_forward_ref(idx, p, *, n_head, num_classes):
    """f32 XLA reference over the same bf16-quantized matmul weights."""
    B, T = idx.shape
    C = p["wte"].shape[1]
    L = p["ln1_w"].shape[0]
    H = n_head
    hd = C // H
    f32 = jnp.float32

    def q16(w):          # match the kernel's bf16 weight storage
        return w.astype(jnp.bfloat16).astype(f32)

    def ln(x, w, b, eps=1e-5):
        mu = jnp.mean(x, -1, keepdims=True)
        var = jnp.mean((x - mu) ** 2, -1, keepdims=True)
        return (x - mu) / jnp.sqrt(var + eps) * w + b

    x = jnp.take(p["wte"], idx, axis=0) + p["wpe"][:T][None]
    causal = jnp.tril(jnp.ones((T, T), bool))
    for l in range(L):
        xn = ln(x, p["ln1_w"][l], p["ln1_b"][l])
        q = (xn @ q16(p["w_q"][l]) + p["b_q"][l]).reshape(B, T, H, hd)
        k = (xn @ q16(p["w_k"][l]) + p["b_k"][l]).reshape(B, T, H, hd)
        v = (xn @ q16(p["w_v"][l]) + p["b_v"][l]).reshape(B, T, H, hd)
        q, k, v = (t.transpose(0, 2, 1, 3) for t in (q, k, v))
        s = jnp.einsum("bhtd,bhsd->bhts", q, k) / math.sqrt(hd)
        s = jnp.where(causal[None, None], s, -jnp.inf)
        att = jax.nn.softmax(s, axis=-1)
        o = jnp.einsum("bhts,bhsd->bhtd", att, v)
        o = o.transpose(0, 2, 1, 3).reshape(B, T, C)
        x = x + o @ q16(p["w_o"][l]) + p["b_o"][l]
        xn2 = ln(x, p["ln2_w"][l], p["ln2_b"][l])
        h1 = jax.nn.gelu(xn2 @ q16(p["w_fc"][l]) + p["b_fc"][l],
                         approximate=False)
        x = x + h1 @ q16(p["w_pr"][l]) + p["b_pr"][l]
    xf = ln(x[:, -1, :], p["lnf_w"], p["lnf_b"])
    logits = xf @ q16(p["w_s"]) + p["b_s"]
    return logits[:, :num_classes]


# ------------------------------- param init ----------------------------------


def init_params(key, *, vocab_size, block_size, n_layer, n_head, n_embd,
                num_classes):
    C, L = n_embd, n_layer
    ks = jax.random.split(key, 22)

    def nrm(k, shape, std=0.02):
        return (std * jax.random.normal(k, shape)).astype(jnp.float32)

    return {
        "wte": nrm(ks[0], (vocab_size, C)),
        "wpe": nrm(ks[1], (block_size, C)),
        "ln1_w": 1.0 + nrm(ks[2], (L, C)),
        "ln1_b": nrm(ks[3], (L, C)),
        "w_q": nrm(ks[4], (L, C, C)),
        "w_k": nrm(ks[5], (L, C, C)),
        "w_v": nrm(ks[6], (L, C, C)),
        "b_q": nrm(ks[7], (L, C)),
        "b_k": nrm(ks[8], (L, C)),
        "b_v": nrm(ks[9], (L, C)),
        "w_o": nrm(ks[10], (L, C, C)),
        "b_o": nrm(ks[11], (L, C)),
        "ln2_w": 1.0 + nrm(ks[12], (L, C)),
        "ln2_b": nrm(ks[13], (L, C)),
        "w_fc": nrm(ks[14], (L, C, 4 * C)),
        "b_fc": nrm(ks[15], (L, 4 * C)),
        "w_pr": nrm(ks[16], (L, 4 * C, C)),
        "b_pr": nrm(ks[17], (L, C)),
        "lnf_w": 1.0 + nrm(ks[18], (C,)),
        "lnf_b": nrm(ks[19], (C,)),
        "w_s": nrm(ks[20], (C, num_classes)),
        "b_s": nrm(ks[21], (num_classes,)),
    }


# ----------------------------------- main ------------------------------------


if __name__ == "__main__":
    # Small, forward-consistent config (real configs should pad C, 4C, T to
    # multiples of 128 lanes for full MXU/vreg density).
    vocab_size = 256
    block_size = 16
    n_layer = 2
    n_head = 2
    n_embd = 32
    num_classes = 3
    batch, seq = 2, 8

    key = jax.random.PRNGKey(0)
    k_idx, k_par = jax.random.split(key)
    idx = jax.random.randint(k_idx, (batch, seq), 0, vocab_size, dtype=jnp.int32)
    params = init_params(k_par, vocab_size=vocab_size, block_size=block_size,
                         n_layer=n_layer, n_head=n_head, n_embd=n_embd,
                         num_classes=num_classes)
    kparams = prepare_params(params, n_head=n_head)

    # batch_split=2 would shard the batch across v7x's two TensorCores.
    fwd = jax.jit(functools.partial(gpt_forward, n_head=n_head,
                                    num_classes=num_classes, batch_split=1))
    logits = fwd(idx, kparams)
    jax.block_until_ready(logits)
    assert logits.shape == (batch, num_classes)

    ref = gpt_forward_ref(idx, params, n_head=n_head, num_classes=num_classes)
    err = float(jnp.max(jnp.abs(logits - ref)))
    assert err < 5e-2, f"kernel vs reference mismatch: max abs err {err}"

    print("KERNEL_OK")
</pallas_src>

<mosaic_0001>
module attributes {stable_mosaic.version = 11 : i64} {
  func.func @gpt_kernel(%arg0: i32, %arg1: i32, %arg2: memref<16x32xf32, #tpu.memory_space<any>>, %arg3: memref<1x6x32xf32, #tpu.memory_space<vmem>>, %arg4: memref<1x1x32x96xbf16, #tpu.memory_space<vmem>>, %arg5: memref<1x1x1x96xf32, #tpu.memory_space<vmem>>, %arg6: memref<1x32x32xbf16, #tpu.memory_space<vmem>>, %arg7: memref<1x1x32x128xbf16, #tpu.memory_space<vmem>>, %arg8: memref<1x1x1x128xf32, #tpu.memory_space<vmem>>, %arg9: memref<1x1x128x32xbf16, #tpu.memory_space<vmem>>, %arg10: memref<2x32xf32, #tpu.memory_space<vmem>>, %arg11: memref<32x128xbf16, #tpu.memory_space<vmem>>, %arg12: memref<1x128xf32, #tpu.memory_space<vmem>>, %arg13: memref<1x2x128xf32, #tpu.memory_space<vmem>>, %arg14: memref<16x32xf32, #tpu.memory_space<vmem>>, %arg15: memref<16x32xf32, #tpu.memory_space<vmem>>, %arg16: memref<!tpu.dma_semaphore, #tpu.memory_space<semaphore_mem>>) attributes {dimension_semantics = [#tpu.dimension_semantics<parallel>, #tpu.dimension_semantics<arbitrary>], iteration_bounds = array<i64: 1, 2>, scalar_prefetch = 0 : i64, scratch_operands = 3 : i64, tpu.core_type = #tpu.core_type<tc>, window_params = [{}, {transform_indices = @transform_1, window_bounds = array<i64: 1, 6, 32>}, {transform_indices = @transform_2, window_bounds = array<i64: 1, 1, 32, 96>}, {transform_indices = @transform_3, window_bounds = array<i64: 1, 1, 1, 96>}, {transform_indices = @transform_4, window_bounds = array<i64: 1, 32, 32>}, {transform_indices = @transform_5, window_bounds = array<i64: 1, 1, 32, 128>}, {transform_indices = @transform_6, window_bounds = array<i64: 1, 1, 1, 128>}, {transform_indices = @transform_7, window_bounds = array<i64: 1, 1, 128, 32>}, {pipeline_mode = #tpu.pipeline_mode<synchronous>, transform_indices = @transform_8, window_bounds = array<i64: 2, 32>}, {pipeline_mode = #tpu.pipeline_mode<synchronous>, transform_indices = @transform_9, window_bounds = array<i64: 32, 128>}, {pipeline_mode = #tpu.pipeline_mode<synchronous>, transform_indices = @transform_10, window_bounds = array<i64: 1, 128>}, {transform_indices = @transform_11, window_bounds = array<i64: 1, 2, 128>}]} {
    %c0_i32 = arith.constant 0 : i32
    %0 = arith.cmpi eq, %arg1, %c0_i32 : i32
    %1 = arith.extui %0 : i1 to i32
    %c0_i32_0 = arith.constant 0 : i32
    %2 = arith.cmpi ne, %1, %c0_i32_0 : i32
    scf.if %2 {
      %c16_i32 = arith.constant 16 : i32
      %198 = arith.muli %arg0, %c16_i32 : i32
      %199 = tpu.assume_multiple %198, 8 : i32
      %c0_i32_76 = arith.constant 0 : i32
      %200 = tpu.memref_slice %arg2[%199, %c0_i32_76] : memref<16x32xf32, #tpu.memory_space<any>> -> memref<16x32xf32, #tpu.memory_space<any>>
      tpu.enqueue_dma source(%200 : memref<16x32xf32, #tpu.memory_space<any>>) target(%arg14 : memref<16x32xf32, #tpu.memory_space<vmem>>) target_semaphore(%arg16 : memref<!tpu.dma_semaphore, #tpu.memory_space<semaphore_mem>>)
      %c0_i32_77 = arith.constant 0 : i32
      %201 = tpu.memref_slice %arg2[%199, %c0_i32_77] : memref<16x32xf32, #tpu.memory_space<any>> -> memref<16x32xf32, #tpu.memory_space<any>>
      tpu.wait_dma2 semaphore(%arg16 : memref<!tpu.dma_semaphore, #tpu.memory_space<semaphore_mem>>) src(%201 : memref<16x32xf32, #tpu.memory_space<any>>) dst(%arg14 : memref<16x32xf32, #tpu.memory_space<vmem>>)
    } else {
    }
    %c0 = arith.constant 0 : index
    %c0_1 = arith.constant 0 : index
    %3 = vector.load %arg14[%c0, %c0_1] : memref<16x32xf32, #tpu.memory_space<vmem>>, vector<16x32xf32>
    %c0_2 = arith.constant 0 : index
    %c0_3 = arith.constant 0 : index
    %c0_4 = arith.constant 0 : index
    %4 = vector.load %arg3[%c0_2, %c0_3, %c0_4] : memref<1x6x32xf32, #tpu.memory_space<vmem>>, vector<1x6x32xf32>
    %5 = vector.shape_cast %4 : vector<1x6x32xf32> to vector<6x32xf32>
    %6 = tpu.iota {dimensions = array<i32: 0>} : vector<8x8xi32>
    %7 = tpu.iota {dimensions = array<i32: 1>} : vector<8x8xi32>
    %8 = arith.cmpi sle, %7, %6 : vector<8x8xi32>
    %9 = vector.shape_cast %8 : vector<8x8xi1> to vector<1x8x8xi1>
    %10 = vector.extract_strided_slice %5 {offsets = [0, 0], sizes = [1, 32], strides = [1, 1]} : vector<6x32xf32> to vector<1x32xf32>
    %11 = vector.extract_strided_slice %5 {offsets = [1, 0], sizes = [1, 32], strides = [1, 1]} : vector<6x32xf32> to vector<1x32xf32>
    %cst = arith.constant dense<0.000000e+00> : vector<16xf32>
    %12 = vector.multi_reduction <add>, %3, %cst [1] : vector<16x32xf32> to vector<16xf32>
    %13 = vector.shape_cast %12 : vector<16xf32> to vector<16x1xf32>
    %cst_5 = arith.constant 3.200000e+01 : f32
    %14 = vector.broadcast %cst_5 : f32 to vector<16x1xf32>
    %15 = arith.divf %13, %14 : vector<16x1xf32>
    %16 = vector.broadcast %15 : vector<16x1xf32> to vector<16x32xf32>
    %17 = arith.subf %3, %16 : vector<16x32xf32>
    %18 = arith.mulf %17, %17 : vector<16x32xf32>
    %cst_6 = arith.constant dense<0.000000e+00> : vector<16xf32>
    %19 = vector.multi_reduction <add>, %18, %cst_6 [1] : vector<16x32xf32> to vector<16xf32>
    %20 = vector.shape_cast %19 : vector<16xf32> to vector<16x1xf32>
    %cst_7 = arith.constant 3.200000e+01 : f32
    %21 = vector.broadcast %cst_7 : f32 to vector<16x1xf32>
    %22 = arith.divf %20, %21 : vector<16x1xf32>
    %23 = vector.broadcast %15 : vector<16x1xf32> to vector<16x32xf32>
    %24 = arith.subf %3, %23 : vector<16x32xf32>
    %cst_8 = arith.constant 9.99999974E-6 : f32
    %25 = vector.broadcast %cst_8 : f32 to vector<16x1xf32>
    %26 = arith.addf %22, %25 : vector<16x1xf32>
    %27 = math.rsqrt %26 : vector<16x1xf32>
    %28 = vector.broadcast %27 : vector<16x1xf32> to vector<16x32xf32>
    %29 = arith.mulf %24, %28 : vector<16x32xf32>
    %30 = vector.broadcast %10 : vector<1x32xf32> to vector<16x32xf32>
    %31 = arith.mulf %29, %30 : vector<16x32xf32>
    %32 = vector.broadcast %11 : vector<1x32xf32> to vector<16x32xf32>
    %33 = arith.addf %31, %32 : vector<16x32xf32>
    %34 = arith.truncf %33 : vector<16x32xf32> to vector<16x32xbf16>
    %c0_9 = arith.constant 0 : index
    %c0_10 = arith.constant 0 : index
    %c0_11 = arith.constant 0 : index
    %c0_12 = arith.constant 0 : index
    %35 = vector.load %arg4[%c0_9, %c0_10, %c0_11, %c0_12] : memref<1x1x32x96xbf16, #tpu.memory_space<vmem>>, vector<1x1x32x96xbf16>
    %36 = vector.shape_cast %35 : vector<1x1x32x96xbf16> to vector<32x96xbf16>
    %cst_13 = arith.constant dense<0.000000e+00> : vector<16x96xf32>
    %37 = tpu.matmul %34, %36, %cst_13 {dimension_numbers = #tpu.dot_dimension_numbers<[1], [0], [0], [1], [0, 0, 1, 1], [], []>} : vector<16x32xbf16>, vector<32x96xbf16>, vector<16x96xf32> -> vector<16x96xf32>
    %c0_14 = arith.constant 0 : index
    %c0_15 = arith.constant 0 : index
    %c0_16 = arith.constant 0 : index
    %c0_17 = arith.constant 0 : index
    %38 = vector.load %arg5[%c0_14, %c0_15, %c0_16, %c0_17] : memref<1x1x1x96xf32, #tpu.memory_space<vmem>>, vector<1x1x1x96xf32>
    %39 = vector.shape_cast %38 : vector<1x1x1x96xf32> to vector<1x96xf32>
    %40 = vector.broadcast %39 : vector<1x96xf32> to vector<16x96xf32>
    %41 = arith.addf %37, %40 : vector<16x96xf32>
    %42 = vector.extract_strided_slice %41 {offsets = [0, 0], sizes = [16, 32], strides = [1, 1]} : vector<16x96xf32> to vector<16x32xf32>
    %cst_18 = arith.constant 2.500000e-01 : f32
    %43 = vector.broadcast %cst_18 : f32 to vector<16x32xf32>
    %44 = arith.mulf %42, %43 : vector<16x32xf32>
    %45 = vector.extract_strided_slice %41 {offsets = [0, 32], sizes = [16, 32], strides = [1, 1]} : vector<16x96xf32> to vector<16x32xf32>
    %46 = vector.extract_strided_slice %41 {offsets = [0, 64], sizes = [16, 32], strides = [1, 1]} : vector<16x96xf32> to vector<16x32xf32>
    %47 = vector.extract_strided_slice %44 {offsets = [0, 0], sizes = [16, 16], strides = [1, 1]} : vector<16x32xf32> to vector<16x16xf32>
    %48 = vector.shape_cast %47 : vector<16x16xf32> to vector<2x8x16xf32>
    %49 = arith.truncf %48 : vector<2x8x16xf32> to vector<2x8x16xbf16>
    %50 = vector.extract_strided_slice %45 {offsets = [0, 0], sizes = [16, 16], strides = [1, 1]} : vector<16x32xf32> to vector<16x16xf32>
    %51 = vector.shape_cast %50 : vector<16x16xf32> to vector<2x8x16xf32>
    %52 = arith.truncf %51 : vector<2x8x16xf32> to vector<2x8x16xbf16>
    %53 = vector.extract_strided_slice %46 {offsets = [0, 0], sizes = [16, 16], strides = [1, 1]} : vector<16x32xf32> to vector<16x16xf32>
    %54 = vector.shape_cast %53 : vector<16x16xf32> to vector<2x8x16xf32>
    %55 = arith.truncf %54 : vector<2x8x16xf32> to vector<2x8x16xbf16>
    "tpu.trace_start"() <{level = 10 : i32, message = "btd,bsd->bts"}> : () -> ()
    %cst_19 = arith.constant dense<0.000000e+00> : vector<2x8x8xf32>
    %56 = tpu.matmul %49, %52, %cst_19 {dimension_numbers = #tpu.dot_dimension_numbers<[2], [2], [1], [1], [0, 0, 0, 1, 1, 1], [0], [0]>} : vector<2x8x16xbf16>, vector<2x8x16xbf16>, vector<2x8x8xf32> -> vector<2x8x8xf32>
    %cst_20 = arith.constant -1.000000e+30 : f32
    "tpu.trace_stop"() : () -> ()
    %57 = vector.shape_cast %9 : vector<1x8x8xi1> to vector<1x8x8xi1>
    %58 = vector.broadcast %57 : vector<1x8x8xi1> to vector<2x8x8xi1>
    %59 = vector.broadcast %cst_20 : f32 to vector<2x8x8xf32>
    %60 = arith.select %58, %56, %59 : vector<2x8x8xi1>, vector<2x8x8xf32>
    %cst_21 = arith.constant dense<0xFF800000> : vector<2x8xf32>
    %61 = vector.multi_reduction <maximumf>, %60, %cst_21 [2] : vector<2x8x8xf32> to vector<2x8xf32>
    %62 = vector.shape_cast %61 : vector<2x8xf32> to vector<2x8x1xf32>
    %63 = vector.broadcast %62 : vector<2x8x1xf32> to vector<2x8x8xf32>
    %64 = arith.subf %60, %63 : vector<2x8x8xf32>
    %65 = math.exp %64 : vector<2x8x8xf32>
    %cst_22 = arith.constant dense<0.000000e+00> : vector<2x8xf32>
    %66 = vector.multi_reduction <add>, %65, %cst_22 [2] : vector<2x8x8xf32> to vector<2x8xf32>
    %67 = vector.shape_cast %66 : vector<2x8xf32> to vector<2x8x1xf32>
    %68 = tpu.reciprocal %67 {approx = true} : vector<2x8x1xf32> -> vector<2x8x1xf32>
    %69 = vector.broadcast %68 : vector<2x8x1xf32> to vector<2x8x8xf32>
    %70 = arith.mulf %65, %69 : vector<2x8x8xf32>
    %71 = arith.truncf %70 : vector<2x8x8xf32> to vector<2x8x8xbf16>
    "tpu.trace_start"() <{level = 10 : i32, message = "bts,bsd->btd"}> : () -> ()
    %cst_23 = arith.constant dense<0.000000e+00> : vector<2x8x16xf32>
    %72 = tpu.matmul %71, %55, %cst_23 {dimension_numbers = #tpu.dot_dimension_numbers<[2], [1], [1], [2], [0, 0, 0, 1, 1, 2], [0], [0]>} : vector<2x8x8xbf16>, vector<2x8x16xbf16>, vector<2x8x16xf32> -> vector<2x8x16xf32>
    "tpu.trace_stop"() : () -> ()
    %73 = vector.shape_cast %72 : vector<2x8x16xf32> to vector<16x16xf32>
    %c0_24 = arith.constant 0 : index
    %c0_25 = arith.constant 0 : index
    %74 = vector.load %arg15[%c0_24, %c0_25] : memref<16x32xf32, #tpu.memory_space<vmem>>, vector<16x16xf32>
    tpu.vector_store %arg15[%c0_24, %c0_25], %73 {strides = array<i32>} : memref<16x32xf32, #tpu.memory_space<vmem>>, vector<16x16xf32>,
    %75 = vector.extract_strided_slice %44 {offsets = [0, 16], sizes = [16, 16], strides = [1, 1]} : vector<16x32xf32> to vector<16x16xf32>
    %76 = vector.shape_cast %75 : vector<16x16xf32> to vector<2x8x16xf32>
    %77 = arith.truncf %76 : vector<2x8x16xf32> to vector<2x8x16xbf16>
    %78 = vector.extract_strided_slice %45 {offsets = [0, 16], sizes = [16, 16], strides = [1, 1]} : vector<16x32xf32> to vector<16x16xf32>
    %79 = vector.shape_cast %78 : vector<16x16xf32> to vector<2x8x16xf32>
    %80 = arith.truncf %79 : vector<2x8x16xf32> to vector<2x8x16xbf16>
    %81 = vector.extract_strided_slice %46 {offsets = [0, 16], sizes = [16, 16], strides = [1, 1]} : vector<16x32xf32> to vector<16x16xf32>
    %82 = vector.shape_cast %81 : vector<16x16xf32> to vector<2x8x16xf32>
    %83 = arith.truncf %82 : vector<2x8x16xf32> to vector<2x8x16xbf16>
    "tpu.trace_start"() <{level = 10 : i32, message = "btd,bsd->bts"}> : () -> ()
    %cst_26 = arith.constant dense<0.000000e+00> : vector<2x8x8xf32>
    %84 = tpu.matmul %77, %80, %cst_26 {dimension_numbers = #tpu.dot_dimension_numbers<[2], [2], [1], [1], [0, 0, 0, 1, 1, 1], [0], [0]>} : vector<2x8x16xbf16>, vector<2x8x16xbf16>, vector<2x8x8xf32> -> vector<2x8x8xf32>
    %cst_27 = arith.constant -1.000000e+30 : f32
    "tpu.trace_stop"() : () -> ()
    %85 = vector.shape_cast %9 : vector<1x8x8xi1> to vector<1x8x8xi1>
    %86 = vector.broadcast %85 : vector<1x8x8xi1> to vector<2x8x8xi1>
    %87 = vector.broadcast %cst_27 : f32 to vector<2x8x8xf32>
    %88 = arith.select %86, %84, %87 : vector<2x8x8xi1>, vector<2x8x8xf32>
    %cst_28 = arith.constant dense<0xFF800000> : vector<2x8xf32>
    %89 = vector.multi_reduction <maximumf>, %88, %cst_28 [2] : vector<2x8x8xf32> to vector<2x8xf32>
    %90 = vector.shape_cast %89 : vector<2x8xf32> to vector<2x8x1xf32>
    %91 = vector.broadcast %90 : vector<2x8x1xf32> to vector<2x8x8xf32>
    %92 = arith.subf %88, %91 : vector<2x8x8xf32>
    %93 = math.exp %92 : vector<2x8x8xf32>
    %cst_29 = arith.constant dense<0.000000e+00> : vector<2x8xf32>
    %94 = vector.multi_reduction <add>, %93, %cst_29 [2] : vector<2x8x8xf32> to vector<2x8xf32>
    %95 = vector.shape_cast %94 : vector<2x8xf32> to vector<2x8x1xf32>
    %96 = tpu.reciprocal %95 {approx = true} : vector<2x8x1xf32> -> vector<2x8x1xf32>
    %97 = vector.broadcast %96 : vector<2x8x1xf32> to vector<2x8x8xf32>
    %98 = arith.mulf %93, %97 : vector<2x8x8xf32>
    %99 = arith.truncf %98 : vector<2x8x8xf32> to vector<2x8x8xbf16>
    "tpu.trace_start"() <{level = 10 : i32, message = "bts,bsd->btd"}> : () -> ()
    %cst_30 = arith.constant dense<0.000000e+00> : vector<2x8x16xf32>
    %100 = tpu.matmul %99, %83, %cst_30 {dimension_numbers = #tpu.dot_dimension_numbers<[2], [1], [1], [2], [0, 0, 0, 1, 1, 2], [0], [0]>} : vector<2x8x8xbf16>, vector<2x8x16xbf16>, vector<2x8x16xf32> -> vector<2x8x16xf32>
    "tpu.trace_stop"() : () -> ()
    %101 = vector.shape_cast %100 : vector<2x8x16xf32> to vector<16x16xf32>
    %c0_31 = arith.constant 0 : index
    %c16 = arith.constant 16 : index
    %102 = vector.load %arg15[%c0_31, %c16] : memref<16x32xf32, #tpu.memory_space<vmem>>, vector<16x16xf32>
    tpu.vector_store %arg15[%c0_31, %c16], %101 {strides = array<i32>} : memref<16x32xf32, #tpu.memory_space<vmem>>, vector<16x16xf32>,
    %c0_32 = arith.constant 0 : index
    %c0_33 = arith.constant 0 : index
    %103 = vector.load %arg15[%c0_32, %c0_33] : memref<16x32xf32, #tpu.memory_space<vmem>>, vector<16x32xf32>
    %104 = arith.truncf %103 : vector<16x32xf32> to vector<16x32xbf16>
    %c0_34 = arith.constant 0 : index
    %c0_35 = arith.constant 0 : index
    %c0_36 = arith.constant 0 : index
    %105 = vector.load %arg6[%c0_34, %c0_35, %c0_36] : memref<1x32x32xbf16, #tpu.memory_space<vmem>>, vector<1x32x32xbf16>
    %106 = vector.shape_cast %105 : vector<1x32x32xbf16> to vector<32x32xbf16>
    %cst_37 = arith.constant dense<0.000000e+00> : vector<16x32xf32>
    %107 = tpu.matmul %104, %106, %cst_37 {dimension_numbers = #tpu.dot_dimension_numbers<[1], [0], [0], [1], [0, 0, 1, 1], [], []>} : vector<16x32xbf16>, vector<32x32xbf16>, vector<16x32xf32> -> vector<16x32xf32>
    %108 = arith.addf %3, %107 : vector<16x32xf32>
    %109 = vector.extract_strided_slice %5 {offsets = [4, 0], sizes = [1, 32], strides = [1, 1]} : vector<6x32xf32> to vector<1x32xf32>
    %110 = vector.broadcast %109 : vector<1x32xf32> to vector<16x32xf32>
    %111 = arith.addf %108, %110 : vector<16x32xf32>
    %112 = vector.extract_strided_slice %5 {offsets = [2, 0], sizes = [1, 32], strides = [1, 1]} : vector<6x32xf32> to vector<1x32xf32>
    %113 = vector.extract_strided_slice %5 {offsets = [3, 0], sizes = [1, 32], strides = [1, 1]} : vector<6x32xf32> to vector<1x32xf32>
    %cst_38 = arith.constant dense<0.000000e+00> : vector<16xf32>
    %114 = vector.multi_reduction <add>, %111, %cst_38 [1] : vector<16x32xf32> to vector<16xf32>
    %115 = vector.shape_cast %114 : vector<16xf32> to vector<16x1xf32>
    %cst_39 = arith.constant 3.200000e+01 : f32
    %116 = vector.broadcast %cst_39 : f32 to vector<16x1xf32>
    %117 = arith.divf %115, %116 : vector<16x1xf32>
    %118 = vector.broadcast %117 : vector<16x1xf32> to vector<16x32xf32>
    %119 = arith.subf %111, %118 : vector<16x32xf32>
    %120 = arith.mulf %119, %119 : vector<16x32xf32>
    %cst_40 = arith.constant dense<0.000000e+00> : vector<16xf32>
    %121 = vector.multi_reduction <add>, %120, %cst_40 [1] : vector<16x32xf32> to vector<16xf32>
    %122 = vector.shape_cast %121 : vector<16xf32> to vector<16x1xf32>
    %cst_41 = arith.constant 3.200000e+01 : f32
    %123 = vector.broadcast %cst_41 : f32 to vector<16x1xf32>
    %124 = arith.divf %122, %123 : vector<16x1xf32>
    %125 = vector.broadcast %117 : vector<16x1xf32> to vector<16x32xf32>
    %126 = arith.subf %111, %125 : vector<16x32xf32>
    %cst_42 = arith.constant 9.99999974E-6 : f32
    %127 = vector.broadcast %cst_42 : f32 to vector<16x1xf32>
    %128 = arith.addf %124, %127 : vector<16x1xf32>
    %129 = math.rsqrt %128 : vector<16x1xf32>
    %130 = vector.broadcast %129 : vector<16x1xf32> to vector<16x32xf32>
    %131 = arith.mulf %126, %130 : vector<16x32xf32>
    %132 = vector.broadcast %112 : vector<1x32xf32> to vector<16x32xf32>
    %133 = arith.mulf %131, %132 : vector<16x32xf32>
    %134 = vector.broadcast %113 : vector<1x32xf32> to vector<16x32xf32>
    %135 = arith.addf %133, %134 : vector<16x32xf32>
    %136 = arith.truncf %135 : vector<16x32xf32> to vector<16x32xbf16>
    %cst_43 = arith.constant 0.000000e+00 : f32
    %137 = vector.broadcast %cst_43 : f32 to vector<16x32xf32>
    %c0_44 = arith.constant 0 : index
    %c0_45 = arith.constant 0 : index
    %c0_46 = arith.constant 0 : index
    %c0_47 = arith.constant 0 : index
    %138 = vector.load %arg7[%c0_44, %c0_45, %c0_46, %c0_47] : memref<1x1x32x128xbf16, #tpu.memory_space<vmem>>, vector<1x1x32x128xbf16>
    %139 = vector.shape_cast %138 : vector<1x1x32x128xbf16> to vector<32x128xbf16>
    %cst_48 = arith.constant dense<0.000000e+00> : vector<16x128xf32>
    %140 = tpu.matmul %136, %139, %cst_48 {dimension_numbers = #tpu.dot_dimension_numbers<[1], [0], [0], [1], [0, 0, 1, 1], [], []>} : vector<16x32xbf16>, vector<32x128xbf16>, vector<16x128xf32> -> vector<16x128xf32>
    %c0_49 = arith.constant 0 : index
    %c0_50 = arith.constant 0 : index
    %c0_51 = arith.constant 0 : index
    %c0_52 = arith.constant 0 : index
    %141 = vector.load %arg8[%c0_49, %c0_50, %c0_51, %c0_52] : memref<1x1x1x128xf32, #tpu.memory_space<vmem>>, vector<1x1x1x128xf32>
    %142 = vector.shape_cast %141 : vector<1x1x1x128xf32> to vector<1x128xf32>
    %143 = vector.broadcast %142 : vector<1x128xf32> to vector<16x128xf32>
    %144 = arith.addf %140, %143 : vector<16x128xf32>
    %cst_53 = arith.constant 5.000000e-01 : f32
    %145 = vector.broadcast %cst_53 : f32 to vector<16x128xf32>
    %146 = arith.mulf %145, %144 : vector<16x128xf32>
    %cst_54 = arith.constant 0.707106769 : f32
    %147 = vector.broadcast %cst_54 : f32 to vector<16x128xf32>
    %148 = arith.mulf %144, %147 : vector<16x128xf32>
    %149 = math.absf %148 : vector<16x128xf32>
    %cst_55 = arith.constant 0.327591091 : f32
    %150 = vector.broadcast %cst_55 : f32 to vector<16x128xf32>
    %151 = arith.mulf %150, %149 : vector<16x128xf32>
    %cst_56 = arith.constant 1.000000e+00 : f32
    %152 = vector.broadcast %cst_56 : f32 to vector<16x128xf32>
    %153 = arith.addf %152, %151 : vector<16x128xf32>
    %cst_57 = arith.constant 1.000000e+00 : f32
    %154 = vector.broadcast %cst_57 : f32 to vector<16x128xf32>
    %155 = arith.divf %154, %153 : vector<16x128xf32>
    %cst_58 = arith.constant 1.06140542 : f32
    %156 = vector.broadcast %cst_58 : f32 to vector<16x128xf32>
    %157 = arith.mulf %156, %155 : vector<16x128xf32>
    %cst_59 = arith.constant -1.45315206 : f32
    %158 = vector.broadcast %cst_59 : f32 to vector<16x128xf32>
    %159 = arith.addf %157, %158 : vector<16x128xf32>
    %160 = arith.mulf %159, %155 : vector<16x128xf32>
    %cst_60 = arith.constant 1.42141378 : f32
    %161 = vector.broadcast %cst_60 : f32 to vector<16x128xf32>
    %162 = arith.addf %160, %161 : vector<16x128xf32>
    %163 = arith.mulf %162, %155 : vector<16x128xf32>
    %cst_61 = arith.constant -0.284496725 : f32
    %164 = vector.broadcast %cst_61 : f32 to vector<16x128xf32>
    %165 = arith.addf %163, %164 : vector<16x128xf32>
    %166 = arith.mulf %165, %155 : vector<16x128xf32>
    %cst_62 = arith.constant 0.254829586 : f32
    %167 = vector.broadcast %cst_62 : f32 to vector<16x128xf32>
    %168 = arith.addf %166, %167 : vector<16x128xf32>
    %169 = arith.mulf %168, %155 : vector<16x128xf32>
    %cst_63 = arith.constant 0.000000e+00 : f32
    %170 = vector.broadcast %cst_63 : f32 to vector<16x128xf32>
    %171 = arith.subf %170, %149 : vector<16x128xf32>
    %172 = arith.mulf %171, %149 : vector<16x128xf32>
    %173 = math.exp %172 : vector<16x128xf32>
    %174 = arith.mulf %169, %173 : vector<16x128xf32>
    %cst_64 = arith.constant 1.000000e+00 : f32
    %175 = vector.broadcast %cst_64 : f32 to vector<16x128xf32>
    %176 = arith.subf %175, %174 : vector<16x128xf32>
    %cst_65 = arith.constant 0.000000e+00 : f32
    %177 = vector.broadcast %cst_65 : f32 to vector<16x128xf32>
    %178 = arith.cmpf oge, %148, %177 : vector<16x128xf32>
    %cst_66 = arith.constant 0.000000e+00 : f32
    %179 = vector.broadcast %cst_66 : f32 to vector<16x128xf32>
    %180 = arith.subf %179, %176 : vector<16x128xf32>
    %181 = arith.select %178, %176, %180 : vector<16x128xi1>, vector<16x128xf32>
    %cst_67 = arith.constant 1.000000e+00 : f32
    %182 = vector.broadcast %cst_67 : f32 to vector<16x128xf32>
    %183 = arith.addf %182, %181 : vector<16x128xf32>
    %184 = arith.mulf %146, %183 : vector<16x128xf32>
    %185 = arith.truncf %184 : vector<16x128xf32> to vector<16x128xbf16>
    %c0_68 = arith.constant 0 : index
    %c0_69 = arith.constant 0 : index
    %c0_70 = arith.constant 0 : index
    %c0_71 = arith.constant 0 : index
    %186 = vector.load %arg9[%c0_68, %c0_69, %c0_70, %c0_71] : memref<1x1x128x32xbf16, #tpu.memory_space<vmem>>, vector<1x1x128x32xbf16>
    %187 = vector.shape_cast %186 : vector<1x1x128x32xbf16> to vector<128x32xbf16>
    %cst_72 = arith.constant dense<0.000000e+00> : vector<16x32xf32>
    %188 = tpu.matmul %185, %187, %cst_72 {dimension_numbers = #tpu.dot_dimension_numbers<[1], [0], [0], [1], [0, 0, 1, 1], [], []>} : vector<16x128xbf16>, vector<128x32xbf16>, vector<16x32xf32> -> vector<16x32xf32>
    %189 = arith.addf %137, %188 : vector<16x32xf32>
    %190 = arith.addf %111, %189 : vector<16x32xf32>
    %191 = vector.extract_strided_slice %5 {offsets = [5, 0], sizes = [1, 32], strides = [1, 1]} : vector<6x32xf32> to vector<1x32xf32>
    %192 = vector.broadcast %191 : vector<1x32xf32> to vector<16x32xf32>
    %193 = arith.addf %190, %192 : vector<16x32xf32>
    %c0_73 = arith.constant 0 : index
    %c0_74 = arith.constant 0 : index
    %194 = vector.load %arg14[%c0_73, %c0_74] : memref<16x32xf32, #tpu.memory_space<vmem>>, vector<16x32xf32>
    tpu.vector_store %arg14[%c0_73, %c0_74], %193 {strides = array<i32>} : memref<16x32xf32, #tpu.memory_space<vmem>>, vector<16x32xf32>,
    %c1_i32 = arith.constant 1 : i32
    %195 = arith.cmpi eq, %arg1, %c1_i32 : i32
    %196 = arith.extui %195 : i1 to i32
    %c0_i32_75 = arith.constant 0 : i32
    %197 = arith.cmpi ne, %196, %c0_i32_75 : i32
    scf.if %197 {
      %198 = vector.shape_cast %193 : vector<16x32xf32> to vector<2x8x32xf32>
      %199 = vector.extract_strided_slice %198 {offsets = [0, 7, 0], sizes = [2, 1, 32], strides = [1, 1, 1]} : vector<2x8x32xf32> to vector<2x1x32xf32>
      %200 = vector.shape_cast %199 : vector<2x1x32xf32> to vector<2x32xf32>
      %c0_76 = arith.constant 0 : index
      %c0_77 = arith.constant 0 : index
      %201 = vector.load %arg10[%c0_76, %c0_77] : memref<2x32xf32, #tpu.memory_space<vmem>>, vector<2x32xf32>
      %202 = vector.extract_strided_slice %201 {offsets = [0, 0], sizes = [1, 32], strides = [1, 1]} : vector<2x32xf32> to vector<1x32xf32>
      %203 = vector.extract_strided_slice %201 {offsets = [1, 0], sizes = [1, 32], strides = [1, 1]} : vector<2x32xf32> to vector<1x32xf32>
      %cst_78 = arith.constant dense<0.000000e+00> : vector<2xf32>
      %204 = vector.multi_reduction <add>, %200, %cst_78 [1] : vector<2x32xf32> to vector<2xf32>
      %205 = vector.shape_cast %204 : vector<2xf32> to vector<2x1xf32>
      %cst_79 = arith.constant 3.200000e+01 : f32
      %206 = vector.broadcast %cst_79 : f32 to vector<2x1xf32>
      %207 = arith.divf %205, %206 : vector<2x1xf32>
      %208 = vector.broadcast %207 : vector<2x1xf32> to vector<2x32xf32>
      %209 = arith.subf %200, %208 : vector<2x32xf32>
      %210 = arith.mulf %209, %209 : vector<2x32xf32>
      %cst_80 = arith.constant dense<0.000000e+00> : vector<2xf32>
      %211 = vector.multi_reduction <add>, %210, %cst_80 [1] : vector<2x32xf32> to vector<2xf32>
      %212 = vector.shape_cast %211 : vector<2xf32> to vector<2x1xf32>
      %cst_81 = arith.constant 3.200000e+01 : f32
      %213 = vector.broadcast %cst_81 : f32 to vector<2x1xf32>
      %214 = arith.divf %212, %213 : vector<2x1xf32>
      %215 = vector.broadcast %207 : vector<2x1xf32> to vector<2x32xf32>
      %216 = arith.subf %200, %215 : vector<2x32xf32>
      %cst_82 = arith.constant 9.99999974E-6 : f32
      %217 = vector.broadcast %cst_82 : f32 to vector<2x1xf32>
      %218 = arith.addf %214, %217 : vector<2x1xf32>
      %219 = math.rsqrt %218 : vector<2x1xf32>
      %220 = vector.broadcast %219 : vector<2x1xf32> to vector<2x32xf32>
      %221 = arith.mulf %216, %220 : vector<2x32xf32>
      %222 = vector.broadcast %202 : vector<1x32xf32> to vector<2x32xf32>
      %223 = arith.mulf %221, %222 : vector<2x32xf32>
      %224 = vector.broadcast %203 : vector<1x32xf32> to vector<2x32xf32>
      %225 = arith.addf %223, %224 : vector<2x32xf32>
      %226 = arith.truncf %225 : vector<2x32xf32> to vector<2x32xbf16>
      %c0_83 = arith.constant 0 : index
      %c0_84 = arith.constant 0 : index
      %227 = vector.load %arg11[%c0_83, %c0_84] : memref<32x128xbf16, #tpu.memory_space<vmem>>, vector<32x128xbf16>
      %cst_85 = arith.constant dense<0.000000e+00> : vector<2x128xf32>
      %228 = tpu.matmul %226, %227, %cst_85 {dimension_numbers = #tpu.dot_dimension_numbers<[1], [0], [0], [1], [0, 0, 1, 1], [], []>} : vector<2x32xbf16>, vector<32x128xbf16>, vector<2x128xf32> -> vector<2x128xf32>
      %c0_86 = arith.constant 0 : index
      %c0_87 = arith.constant 0 : index
      %229 = vector.load %arg12[%c0_86, %c0_87] : memref<1x128xf32, #tpu.memory_space<vmem>>, vector<1x128xf32>
      %230 = vector.broadcast %229 : vector<1x128xf32> to vector<2x128xf32>
      %231 = arith.addf %228, %230 : vector<2x128xf32>
      %c0_88 = arith.constant 0 : index
      %c0_89 = arith.constant 0 : index
      %c0_90 = arith.constant 0 : index
      %232 = vector.load %arg13[%c0_88, %c0_89, %c0_90] : memref<1x2x128xf32, #tpu.memory_space<vmem>>, vector<1x2x128xf32>
      %233 = vector.shape_cast %232 : vector<1x2x128xf32> to vector<2x128xf32>
      %234 = vector.shape_cast %231 : vector<2x128xf32> to vector<1x2x128xf32>
      tpu.vector_store %arg13[%c0_88, %c0_89, %c0_90], %234 {strides = array<i32>} : memref<1x2x128xf32, #tpu.memory_space<vmem>>, vector<1x2x128xf32>,
    } else {
    }
    return
  }
  func.func @transform_1(%arg0: i32, %arg1: i32) -> (i32, i32, i32) {
    %c0_i32 = arith.constant 0 : i32
    %c0_i32_0 = arith.constant 0 : i32
    %c0_i32_1 = arith.constant 0 : i32
    return %arg1, %c0_i32, %c0_i32_0 : i32, i32, i32
  }
  func.func @transform_2(%arg0: i32, %arg1: i32) -> (i32, i32, i32, i32) {
    %c0_i32 = arith.constant 0 : i32
    %c0_i32_0 = arith.constant 0 : i32
    %c0_i32_1 = arith.constant 0 : i32
    %c0_i32_2 = arith.constant 0 : i32
    return %arg1, %c0_i32, %c0_i32_0, %c0_i32_1 : i32, i32, i32, i32
  }
  func.func @transform_3(%arg0: i32, %arg1: i32) -> (i32, i32, i32, i32) {
    %c0_i32 = arith.constant 0 : i32
    %c0_i32_0 = arith.constant 0 : i32
    %c0_i32_1 = arith.constant 0 : i32
    %c0_i32_2 = arith.constant 0 : i32
    return %arg1, %c0_i32, %c0_i32_0, %c0_i32_1 : i32, i32, i32, i32
  }
  func.func @transform_4(%arg0: i32, %arg1: i32) -> (i32, i32, i32) {
    %c0_i32 = arith.constant 0 : i32
    %c0_i32_0 = arith.constant 0 : i32
    %c0_i32_1 = arith.constant 0 : i32
    return %arg1, %c0_i32, %c0_i32_0 : i32, i32, i32
  }
  func.func @transform_5(%arg0: i32, %arg1: i32) -> (i32, i32, i32, i32) {
    %c0_i32 = arith.constant 0 : i32
    %c0_i32_0 = arith.constant 0 : i32
    %c0_i32_1 = arith.constant 0 : i32
    %c0_i32_2 = arith.constant 0 : i32
    return %arg1, %c0_i32, %c0_i32_0, %c0_i32_1 : i32, i32, i32, i32
  }
  func.func @transform_6(%arg0: i32, %arg1: i32) -> (i32, i32, i32, i32) {
    %c0_i32 = arith.constant 0 : i32
    %c0_i32_0 = arith.constant 0 : i32
    %c0_i32_1 = arith.constant 0 : i32
    %c0_i32_2 = arith.constant 0 : i32
    return %arg1, %c0_i32, %c0_i32_0, %c0_i32_1 : i32, i32, i32, i32
  }
  func.func @transform_7(%arg0: i32, %arg1: i32) -> (i32, i32, i32, i32) {
    %c0_i32 = arith.constant 0 : i32
    %c0_i32_0 = arith.constant 0 : i32
    %c0_i32_1 = arith.constant 0 : i32
    %c0_i32_2 = arith.constant 0 : i32
    return %arg1, %c0_i32, %c0_i32_0, %c0_i32_1 : i32, i32, i32, i32
  }
  func.func @transform_8(%arg0: i32, %arg1: i32) -> (i32, i32) {
    %c0_i32 = arith.constant 0 : i32
    %c0_i32_0 = arith.constant 0 : i32
    %c0_i32_1 = arith.constant 0 : i32
    return %c0_i32, %c0_i32_0 : i32, i32
  }
  func.func @transform_9(%arg0: i32, %arg1: i32) -> (i32, i32) {
    %c0_i32 = arith.constant 0 : i32
    %c0_i32_0 = arith.constant 0 : i32
    %c0_i32_1 = arith.constant 0 : i32
    return %c0_i32, %c0_i32_0 : i32, i32
  }
  func.func @transform_10(%arg0: i32, %arg1: i32) -> (i32, i32) {
    %c0_i32 = arith.constant 0 : i32
    %c0_i32_0 = arith.constant 0 : i32
    %c0_i32_1 = arith.constant 0 : i32
    return %c0_i32, %c0_i32_0 : i32, i32
  }
  func.func @transform_11(%arg0: i32, %arg1: i32) -> (i32, i32, i32) {
    %c0_i32 = arith.constant 0 : i32
    %c0_i32_0 = arith.constant 0 : i32
    %c0_i32_1 = arith.constant 0 : i32
    return %arg0, %c0_i32, %c0_i32_0 : i32, i32, i32
  }
}

</mosaic_0001>

<bundles_post_ra>
// kernel: gpt_forward.1
= control target key start
LH: loop header
LB: loop body
LE: loop exit
PB: predicated region body
PF: predicated region fallthrough
CT: control target
= control target key end

     0   :  { %s1977_s0 = inlined_call_operand.vmem [shape: f32[16,32], index: 0, kind: input, shape index: {}]   ;;  %s1978_s1 = inlined_call_operand.vmem [shape: f32[2,6,32], index: 1, kind: input, shape index: {}]   ;;  %s1979_s2 = inlined_call_operand.vmem [shape: bf16[2,1,32,96], index: 2, kind: input, shape index: {}]   ;;  %s1980_s3 = inlined_call_operand.vmem [shape: f32[2,1,1,96], index: 3, kind: input, shape index: {}]   ;;  %s1981_s4 = inlined_call_operand.vmem [shape: bf16[2,32,32], index: 4, kind: input, shape index: {}]   ;;  %s1982_s5 = inlined_call_operand.vmem [shape: bf16[2,1,32,128], index: 5, kind: input, shape index: {}]   ;;  %s1983_s6 = inlined_call_operand.vmem [shape: f32[2,1,1,128], index: 6, kind: input, shape index: {}]   ;;  %s1984_s7 = inlined_call_operand.vmem [shape: bf16[2,1,128,32], index: 7, kind: input, shape index: {}]   ;;  %s1985_s8 = inlined_call_operand.vmem [shape: f32[2,32], index: 8, kind: input, shape index: {}]   ;;  %s1986_s9 = inlined_call_operand.vmem [shape: bf16[32,128], index: 9, kind: input, shape index: {}]   ;;  %s1987_s10 = inlined_call_operand.vmem [shape: f32[1,128], index: 10, kind: input, shape index: {}]   ;;  %s1988_s11 = inlined_call_operand.hbm [shape: f32[1,2,128], index: 11, kind: output, shape index: {}]  }
   0x1   :  { %1990 = sst [smem:[#allocation12_spill]] %s1978_s1 }
   0x2   :  { %1991 = sst [smem:[#allocation13_spill]] %s1979_s2 }
   0x3   :  { %16 = vsyncpa [#allocation6], 0  ;;  %s1743_s17 = smov 0   ;;  %s1745_s18 = smov 0  }
   0x4   :  { %s1747_s19 = smov 0  }
   0x5 LB: > { %1992 = sst [smem:[#allocation10_spill]] %s1669_s18  ;;  %s31_s21 = sadd.s32 1, %s1669_s18  ;;  %s1673_s19 = sphi %s1747_s19, %s22_s19   ;;  %s1669_s18 = sphi %s1745_s18, %s1998_s18   ;;  %s1665_s17 = sphi %s1743_s17, %s1997_s17  }
   0x6   : > { %p32_p0 = scmp.ge.s32.totalorder %s31_s21, 2  ;;  %p1425_p1 = scmp.ge.s32.totalorder %s1673_s19, 1 }
   0x7   : > { %p381_p2 = scmp.lt.s32.totalorder %s1673_s19, 3 }
   0x8   : > { %s2000_s21 = smov (%p32_p0, %s31_s21), 0 }
   0x9   : > { %1993 = sst [smem:[#allocation11_spill]] %s2000_s21  ;;  %p382_p3 = pnand %p1425_p1, %p381_p2 }
   0xa   : > { %p439_p4 = scmp.lt.s32.totalorder (!%p382_p3), %s1665_s17, 1  ;;  %s1994_s1 = sld [smem:[#allocation12_spill]] (!%p382_p3) }
   0xb   : > { %385 = sbr.rel (%p382_p3) target bundleno = 2428 (0x97c), region = 60  ;;  %s1995_s2 = sld [smem:[#allocation13_spill]] (!%p382_p3) }
   0xc   : > { %p1435_p5 = scmp.ne.s32.totalorder (!%p382_p3), %s1665_s17, 0 }
  0x10   : > { %s1766_s22 = scalar_select %p439_p4, %s1665_s17, 1 }
  0x12   : > { %s1426_s23 = sshll.u32 %s1766_s22, 3  ;;  %s1518_s24 = sshll.u32 %s1766_s22, 4 }
  0x13   : > { %s1773_s27 = scalar_lea.vmem %s1994_s1, %s1426_s23  ;;  %s1778_s30 = scalar_lea.vmem %s1995_s2, %s1518_s24 }
  0x14   : > { %s450_s14 = scalar_lea.vmem %s1980_s3, %s1766_s22  ;;  %s1787_s20 = scalar_lea.vmem %s1981_s4, %s1518_s24 }
  0x15   : > { %s1792_s25 = scalar_lea.vmem %s1982_s5, %s1518_s24  ;;  %s463_s28 = scalar_lea.vmem %s1983_s6, %s1766_s22 }
  0x16   : > { %s1521_s29 = sshll.u32 %s1766_s22, 6  ;;  %473 = sbr.rel (%p1435_p5) target bundleno = 33 (0x21), region = 64 }
  0x17   : > { %s1802_s12 = scalar_lea.vmem %s1984_s7, %s1521_s29 }
  0x1b   : > { %v486_v0 = vld [vmem:[%s1977_s0] sm:$0xff]  ;;  %v488_v1 = vld [vmem:[%s1977_s0 + $0x8] sm:$0xff] }
  0x1c   : > { %487 = vst [vmem:[#allocation2] sm:$0xff] %v486_v0 }
  0x1d   : > { %489 = vst [vmem:[#allocation2 + $0x8] sm:$0xff] %v488_v1 }
  0x1e   : > { %495 = vsyncadd [#allocation4], 256 }
  0x1f   : > { %1657 = dma.done.wait [#allocation4], 256 }
  0x20   : > { %1658 = vsyncadd [#allocation4], 4294967040 }
  0x21 PF: > { %vm507_vm0 = vcmask 261120   ;;  %v1675_v6 = vmov 32.0   ;;  %v1523_v23 = vld [vmem:[%s1778_s30 + $0x8] sm:$0xff]  ;;  %v1522_v25 = vld [vmem:[%s1778_s30] sm:$0xff]  ;;  %s1676_s24 = smov 80   ;;  %s1678_s30 = smov 112  }
  0x22   : > { %1578 = vrcp.f32 %v1675_v6  ;;  %595 = vmatpush.bf16.msra.mxu0 %v1523_v23  ;;  %v1832_v42 = vld [vmem:[%s1773_s27] sm:$0x3f]  ;;  %s1677_s27 = smov 96   ;;  %vm614_vm8 = vcmask 130048   ;;  %v502_v23 = vlaneseq  ;;  %vm662_vm10 = vcmask 64512   ;;  %s1680_s16 = smov 48  }
  0x23   : > { %v1811_v2 = vld [vmem:[#allocation2] sm:$0xff]  ;;  %v559_v45 = vperm.slane %v1832_v42, 0  ;;  %v562_v50 = vperm.slane %v1832_v42, 1  ;;  %vm692_vm11 = vcmask 1043456   ;;  %s1681_s23 = smov 16   ;;  %vm860_vm12 = vcmask 261248  }
  0x24   : > { %v508_v3 = vsel %vm507_vm0, %v1811_v2, 0.0  ;;  %v1815_v4 = vld [vmem:[#allocation2 + $0x8] sm:$0xff]  ;;  %v1576_v55 = vld [vmem:[%s450_s14] ss:$0 sm:$0xff]  ;;  %s1679_s14 = smov 64   ;;  %p1503_p6 = scmp.ne.s32.totalorder %s1665_s17, 1 }
  0x25   : > { %509 = vadd.xlane.f32.xlu0 %v508_v3  ;;  %v511_v5 = vsel %vm507_vm0, %v1815_v4, 0.0 }
  0x26   : > { %596 = vmatpush.bf16.msra.mxu0 %v1522_v25  ;;  %v505_v25 = vand.u32 127, %v502_v23 }
  0x28   : > { %v1579_v7 = vpop.eup %1578 }
  0x29   : > { %v515_v8 = vmul.f32 32.0, %v1579_v7  ;;  %vm519_vm1 = vweird.f32 %v1579_v7 }
  0x2b   : > { %v516_v9 = vsub.f32 1.0, %v515_v8 }
  0x2d   : > { %512 = vadd.xlane.f32.xlu0 %v511_v5  ;;  %v517_v10 = vmul.f32 %v1579_v7, %v516_v9 }
  0x2f   : > { %v518_v11 = vadd.f32 %v1579_v7, %v517_v10 }
  0x31   : > { %v1819_v12 = vsel %vm519_vm1, %v1579_v7, %v518_v11 }
  0x98   : > { %v510_v13 = vpop.xlane.xlu0 %509 }
  0x99   : > { %v521_v14 = vmul.f32 %v1819_v12, %v510_v13 }
  0x9b   : > { %v523_v15 = vsub.f32 %v1811_v2, %v521_v14 }
  0x9d   : > { %v525_v16 = vmul.f32 %v523_v15, %v523_v15 }
  0x9f   : > { %v527_v17 = vsel %vm507_vm0, %v525_v16, 0.0 }
  0xa0   : > { %528 = vadd.xlane.f32.xlu1 %v527_v17  ;;  %v513_v18 = vpop.xlane.xlu0 %512 }
  0xa1   : > { %v522_v19 = vmul.f32 %v1819_v12, %v513_v18 }
  0xa3   : > { %v524_v20 = vsub.f32 %v1815_v4, %v522_v19 }
  0xa5   : > { %v526_v21 = vmul.f32 %v524_v20, %v524_v20 }
  0xa7   : > { %v530_v22 = vsel %vm507_vm0, %v526_v21, 0.0 }
  0xa8   : > { %531 = vadd.xlane.f32.xlu1 %v530_v22 }
 0x113   : > { %v529_v24 = vpop.xlane.xlu1 %528 }
 0x114   : > { %v533_v26 = vmul.f32 %v529_v24, %v1819_v12  ;;  %v503_v24 = vshrl.u32 %v502_v23, 7 }
 0x116   : > { %v535_v27 = vadd.f32 1e-05, %v533_v26  ;;  %vm506_vm9 = vcmp.le.s32.totalorder %v505_v25, %v503_v24 }
 0x118   : > { %1580 = vrsqrt.f32 %v535_v27  ;;  %vm543_vm3 = vweird.f32 %v535_v27 }
 0x11b   : > { %v532_v28 = vpop.xlane.xlu1 %531 }
 0x11c   : > { %v534_v29 = vmul.f32 %v532_v28, %v1819_v12 }
 0x11e   : > { %v1581_v30 = vpop.eup %1580  ;;  %v536_v31 = vadd.f32 1e-05, %v534_v29 }
 0x11f   : > { %v538_v32 = vmul.f32 %v1581_v30, %v535_v27  ;;  %vm544_vm2 = vweird.f32 %v1581_v30 }
 0x120   : > { %1582 = vrsqrt.f32 %v536_v31  ;;  %vm545_vm4 = vmor %vm543_vm3, %vm544_vm2  ;;  %vm553_vm6 = vweird.f32 %v536_v31 }
 0x121   : > { %v539_v33 = vmul.f32 %v1581_v30, %v538_v32 }
 0x123   : > { %v540_v34 = vmul.f32 0.5, %v539_v33 }
 0x125   : > { %v541_v35 = vsub.f32 1.5, %v540_v34 }
 0x126   : > { %v1583_v36 = vpop.eup %1582 }
 0x127   : > { %v542_v37 = vmul.f32 %v1581_v30, %v541_v35  ;;  %v548_v38 = vmul.f32 %v1583_v36, %v536_v31  ;;  %vm554_vm5 = vweird.f32 %v1583_v36 }
 0x128   : > { %vm555_vm7 = vmor %vm553_vm6, %vm554_vm5 }
 0x129   : > { %v549_v39 = vmul.f32 %v1583_v36, %v548_v38  ;;  %v546_v40 = vsel %vm545_vm4, %v1581_v30, %v542_v37 }
 0x12a   : > { %v557_v44 = vmul.f32 %v546_v40, %v523_v15 }
 0x12b   : > { %v550_v41 = vmul.f32 0.5, %v549_v39 }
 0x12c   : > { %v560_v49 = vmul.f32 %v559_v45, %v557_v44 }
 0x12d   : > { %v551_v43 = vsub.f32 1.5, %v550_v41 }
 0x12e   : > { %v563_v52 = vadd.f32 %v562_v50, %v560_v49 }
 0x12f   : > { %v552_v46 = vmul.f32 %v1583_v36, %v551_v43 }
 0x131   : > { %v556_v47 = vsel %vm555_vm7, %v1583_v36, %v552_v46 }
 0x132   : > { %v558_v48 = vmul.f32 %v556_v47, %v524_v20 }
 0x134   : > { %v561_v51 = vmul.f32 %v559_v45, %v558_v48 }
 0x136   : > { %v564_v53 = vadd.f32 %v562_v50, %v561_v51 }
 0x138   : > { %v565_v54 = vpack.c.bf16 %v564_v53, %v563_v52 }
 0x13a   : > { %1444 = vmatmul.msk.bf16.vlgmr.msra.gmra.mxu0 %vm507_vm0, %v565_v54 }
 0x1b7   : > { %v598_v56 = vpop.f32.mrf.mxu0 }
 0x1b8   : > { %v599_v57 = vadd.f32 %v1576_v55, %v598_v56 }
 0x1ba   : > { %v603_v58 = vmul.f32 0.25, %v599_v57  ;;  %v607_v59 = vpack.c.bf16 %v599_v57, %v599_v57 }
 0x1bc   : > { %v605_v60 = vpack.c.bf16 %v603_v58, %v603_v58  ;;  %v610_v61 = vunpack.c.l.b16 %v607_v59 }
 0x1be   : > { %v1842_v62 = vpack.c.b16 %v610_v61, %v610_v61  ;;  %v733_v63 = vunpack.c.l.b16 %v605_v60 }
 0x1bf   : > { %v600_v0 = vpop.f32.mrf.mxu0 }
 0x1c0   : > { %v601_v1 = vadd.f32 %v1576_v55, %v600_v0  ;;  %737 = vrot.lane.b32.xlu0 %v1842_v62, %s1676_s24  ;;  %612 = vrot.lane.b32.xlu2 %v1842_v62, %s1677_s27  ;;  %v734_v3 = vpack.c.b16 %v733_v63, %v733_v63 }
 0x1c2   : > { %v608_v5 = vpack.c.bf16 %v601_v1, %v601_v1  ;;  %735 = vrot.lane.b32.xlu1 %v734_v3, %s1678_s30  ;;  %v604_v8 = vmul.f32 0.25, %v601_v1 }
 0x1c4   : > { %v635_v6 = vunpack.c.l.b16 %v608_v5  ;;  %v606_v9 = vpack.c.bf16 %v604_v8, %v604_v8 }
 0x1c6   : > { %v1846_v7 = vpack.c.b16 %v635_v6, %v635_v6  ;;  %v759_v10 = vunpack.c.l.b16 %v606_v9 }
 0x1c8   : > { %637 = vrot.lane.b32.xlu2 %v1846_v7, %s1677_s27  ;;  %v760_v11 = vpack.c.b16 %v759_v10, %v759_v10 }
 0x1d0   : > { %763 = vrot.lane.b32.xlu2 %v1846_v7, %s1676_s24 }
 0x1d8   : > { %761 = vrot.lane.b32.xlu2 %v760_v11, %s1678_s30 }
 0x21a   : > { %v613_v13 = vpop.permute.xlu2 %612 }
 0x21b   : > { %v619_v14 = vsel %vm614_vm8, %v613_v13, 0 }
 0x21c   : > { %628 = vmatpush.bf16.xpose.msra.mxu1 %v619_v14 }
 0x222   : > { %v638_v15 = vpop.permute.xlu2 %637 }
 0x223   : > { %1445 = vmatmul.msk.bf16.vlgmr.msra.gmra.mxu1 %vm614_vm8, %v605_v60  ;;  %v643_v16 = vsel %vm614_vm8, %v638_v15, 0 }
 0x224   : > { %652 = vmatpush.bf16.xpose.msra.mxu2 %v643_v16 }
 0x22a   : > { %v764_v17 = vpop.permute.xlu2 %763 }
 0x22b   : > { %1446 = vmatmul.msk.bf16.vlgmr.msra.gmra.mxu2 %vm614_vm8, %v606_v9  ;;  %v769_v18 = vsel %vm614_vm8, %v764_v17, 0 }
 0x22c   : > { %778 = vmatpush.bf16.xpose.msrb.mxu1 %v769_v18 }
 0x232   : > { %v738_v19 = vpop.permute.xlu0 %737  ;;  %v762_v20 = vpop.permute.xlu2 %761 }
 0x233   : > { %1450 = vmatmul.msk.bf16.vlgmr.msrb.gmra.mxu1 %vm614_vm8, %v762_v20  ;;  %v743_v21 = vsel %vm614_vm8, %v738_v19, 0 }
 0x234   : > { %752 = vmatpush.bf16.xpose.msrb.mxu0 %v743_v21  ;;  %v736_v22 = vpop.permute.xlu1 %735 }
 0x23b   : > { %1449 = vmatmul.msk.bf16.vlgmr.msrb.gmra.mxu0 %vm614_vm8, %v736_v22 }
 0x2a0   : > { %v630_v26 = vpop.f32.mrf.mxu1 }
 0x2a1   : > { %v660_v27 = vsel %vm506_vm9, %v630_v26, -1e+30 }
 0x2a2   : > { %v663_v28 = vsel %vm662_vm10, %v660_v27, -inf }
 0x2a3   : > { %664 = vmax.xlane.f32.xlu2 %v663_v28 }
 0x2a8   : > { %v632_v29 = vpop.f32.mrf.mxu1 }
 0x2ae   : > { %v654_v30 = vpop.f32.mrf.mxu2 }
 0x2af   : > { %v661_v31 = vsel %vm506_vm9, %v654_v30, -1e+30 }
 0x2b0   : > { %v780_v32 = vpop.f32.mrf.mxu1  ;;  %v666_v33 = vsel %vm662_vm10, %v661_v31, -inf }
 0x2b1   : > { %v785_v34 = vsel %vm506_vm9, %v780_v32, -1e+30  ;;  %667 = vmax.xlane.f32.xlu0 %v666_v33 }
 0x2b2   : > { %v789_v35 = vsel %vm662_vm10, %v785_v34, -inf }
 0x2b3   : > { %790 = vmax.xlane.f32.xlu2 %v789_v35  ;;  %v1524_v35 = vld [vmem:[%s1787_s20] sm:$0xff] }
 0x2b6   : > { %v656_v36 = vpop.f32.mrf.mxu2 }
 0x2b8   : > { %v754_v37 = vpop.f32.mrf.mxu0  ;;  %v782_v38 = vpop.f32.mrf.mxu1 }
 0x2b9   : > { %v784_v39 = vsel %vm506_vm9, %v754_v37, -1e+30 }
 0x2ba   : > { %v786_v40 = vsel %vm662_vm10, %v784_v39, -inf }
 0x2bb   : > { %787 = vmax.xlane.f32.xlu1 %v786_v40 }
 0x2c0   : > { %v756_v41 = vpop.f32.mrf.mxu0 }
 0x2c1   : > { %v901_v41 = vperm.slane %v1832_v42, 4 }
 0x2cb   : > { %687 = vrot.lane.b32.xlu2 %v1842_v62, %s1679_s14 }
 0x316   : > { %v665_v43 = vpop.xlane.xlu2 %664 }
 0x317   : > { %v669_v44 = vsub.f32 %v660_v27, %v665_v43 }
 0x319   : > { %v671_v45 = vmul.f32 1.442695, %v669_v44 }
 0x31b   : > { %1584 = vpow2.f32 %v671_v45 }
 0x321   : > { %v1585_v46 = vpop.eup %1584 }
 0x322   : > { %v675_v47 = vsel %vm662_vm10, %v1585_v46, 0.0 }
 0x323   : > { %676 = vadd.xlane.f32.xlu0 %v675_v47 }
 0x324   : > { %v668_v51 = vpop.xlane.xlu0 %667 }
 0x325   : > { %v670_v57 = vsub.f32 %v661_v31, %v668_v51 }
 0x326   : > { %v791_v48 = vpop.xlane.xlu2 %790 }
 0x327   : > { %v793_v49 = vsub.f32 %v785_v34, %v791_v48  ;;  %v673_v60 = vmul.f32 1.442695, %v670_v57  ;;  %v1525_v34 = vld [vmem:[%s1787_s20 + $0x8] sm:$0xff] }
 0x328   : > { %891 = vmatpush.bf16.msra.mxu0 %v1525_v34 }
 0x329   : > { %v796_v50 = vmul.f32 1.442695, %v793_v49 }
 0x32b   : > { %1586 = vpow2.f32 %v796_v50 }
 0x32c   : > { %892 = vmatpush.bf16.msra.mxu0 %v1524_v35 }
 0x32e   : > { %v788_v52 = vpop.xlane.xlu1 %787  ;;  %v688_v53 = vpop.permute.xlu2 %687 }
 0x32f   : > { %v792_v54 = vsub.f32 %v784_v39, %v788_v52  ;;  %v694_v55 = vsel %vm692_vm11, %v688_v53, 0 }
 0x330   : > { %703 = vmatpush.bf16.msra.mxu3 %v694_v55 }
 0x331   : > { %v1587_v56 = vpop.eup %1586  ;;  %v794_v58 = vmul.f32 1.442695, %v792_v54 }
 0x332   : > { %v801_v59 = vsel %vm662_vm10, %v1587_v56, 0.0 }
 0x333   : > { %1588 = vpow2.f32 %v794_v58  ;;  %802 = vadd.xlane.f32.xlu2 %v801_v59  ;;  %v1527_v59 = vld [vmem:[%s1792_s25 + $0x8] sm:$0xff] }
 0x334   : > { %1590 = vpow2.f32 %v673_v60  ;;  %984 = vmatpush.bf16.msra.mxu1 %v1527_v59 }
 0x337   : > { %709 = vrot.lane.b32.xlu0 %v1846_v7, %s1679_s14 }
 0x339   : > { %v1589_v61 = vpop.eup %1588 }
 0x33a   : > { %v798_v63 = vsel %vm662_vm10, %v1589_v61, 0.0  ;;  %v1591_v0 = vpop.eup %1590 }
 0x33b   : > { %799 = vadd.xlane.f32.xlu1 %v798_v63  ;;  %v678_v1 = vsel %vm662_vm10, %v1591_v0, 0.0  ;;  %v1526_v63 = vld [vmem:[%s1792_s25] sm:$0xff] }
 0x33c   : > { %985 = vmatpush.bf16.msra.mxu1 %v1526_v63 }
 0x33f   : > { %831 = vrot.lane.b32.xlu0 %v1846_v7, %s1680_s16 }
 0x343   : > { %679 = vadd.xlane.f32.xlu1 %v678_v1 }
 0x35c   : > { %810 = vrot.lane.b32.xlu1 %v1842_v62, %s1680_s16 }
 0x396   : > { %v677_v3 = vpop.xlane.xlu0 %676 }
 0x397   : > { %1592 = vrcp.f32 %v677_v3 }
 0x39d   : > { %v1593_v5 = vpop.eup %1592 }
 0x39e   : > { %v683_v6 = vmul.f32 %v1593_v5, %v1585_v46 }
 0x3a0   : > { %v685_v8 = vpack.c.bf16 %v683_v6, %v683_v6 }
 0x3a2   : > { %1447 = vmatmul.msk.bf16.vlgmr.msra.gmra.mxu3 %vm662_vm10, %v685_v8 }
 0x3a6   : > { %v803_v21 = vpop.xlane.xlu2 %802 }
 0x3a9   : > { %v710_v9 = vpop.permute.xlu0 %709 }
 0x3aa   : > { %v715_v10 = vsel %vm692_vm11, %v710_v9, 0 }
 0x3ab   : > { %724 = vmatpush.bf16.msrb.mxu3 %v715_v10 }
 0x3ae   : > { %v800_v11 = vpop.xlane.xlu1 %799 }
 0x3b1   : > { %v832_v17 = vpop.permute.xlu0 %831 }
 0x3b2   : > { %v837_v20 = vsel %vm692_vm11, %v832_v17, 0 }
 0x3b6   : > { %v680_v13 = vpop.xlane.xlu1 %679 }
 0x3b7   : > { %1594 = vrcp.f32 %v680_v13 }
 0x3b8   : > { %1596 = vrcp.f32 %v800_v11 }
 0x3b9   : > { %1598 = vrcp.f32 %v803_v21 }
 0x3bd   : > { %v1595_v7 = vpop.eup %1594 }
 0x3be   : > { %v684_v14 = vmul.f32 %v1595_v7, %v1591_v0  ;;  %v1597_v62 = vpop.eup %1596 }
 0x3bf   : > { %v806_v16 = vmul.f32 %v1597_v62, %v1589_v61  ;;  %v1599_v23 = vpop.eup %1598 }
 0x3c0   : > { %v686_v15 = vpack.c.bf16 %v684_v14, %v684_v14  ;;  %v807_v24 = vmul.f32 %v1599_v23, %v1587_v56 }
 0x3c1   : > { %v808_v22 = vpack.c.bf16 %v806_v16, %v806_v16 }
 0x3c2   : > { %1448 = vmatmul.msk.bf16.vlgmr.msrb.gmra.mxu3 %vm662_vm10, %v686_v15  ;;  %v809_v25 = vpack.c.bf16 %v807_v24, %v807_v24 }
 0x3ce   : > { %v811_v18 = vpop.permute.xlu1 %810 }
 0x3cf   : > { %v816_v19 = vsel %vm692_vm11, %v811_v18, 0  ;;  %v948_v18 = vperm.slane %v1832_v42, 2 }
 0x3d0   : > { %825 = vmatpush.bf16.msra.mxu3 %v816_v19 }
 0x3d3   : > { %1451 = vmatmul.msk.bf16.vlgmr.msra.gmra.mxu3 %vm662_vm10, %v808_v22  ;;  %v951_v22 = vperm.slane %v1832_v42, 3 }
 0x3d4   : > { %846 = vmatpush.bf16.msrb.mxu3 %v837_v20 }
 0x3e3   : > { %1452 = vmatmul.msk.bf16.vlgmr.msrb.gmra.mxu3 %vm662_vm10, %v809_v25 }
 0x425   : > { %v705_v26 = vpop.f32.mrf.mxu3 }
 0x426   : > { %730 = vst.msk [vmem:[#allocation3] sm:$0xff] %vm614_vm8, %v705_v26 }
 0x42d   : > { %v707_v27 = vpop.f32.mrf.mxu3 }
 0x445   : > { %v726_v28 = vpop.f32.mrf.mxu3 }
 0x446   : > { %731 = vst.msk [vmem:[#allocation3 + $0x8] sm:$0xff] %vm614_vm8, %v726_v28 }
 0x44d   : > { %v728_v29 = vpop.f32.mrf.mxu3 }
 0x44e   : > { %v1577_v29 = vld [vmem:[%s463_s28] ss:$0 sm:$0xff] }
 0x456   : > { %v827_v30 = vpop.f32.mrf.mxu3 }
 0x457   : > { %854 = vrot.lane.b32.xlu0 %v827_v30, %s1681_s23 }
 0x45e   : > { %v829_v31 = vpop.f32.mrf.mxu3 }
 0x466   : > { %v848_v32 = vpop.f32.mrf.mxu3 }
 0x467   : > { %856 = vrot.lane.b32.xlu0 %v848_v32, %s1681_s23 }
 0x46e   : > { %v850_v33 = vpop.f32.mrf.mxu3 }
 0x46f   : > { %v1535_v33 = vld [vmem:[%s1802_s12 + $0x38] sm:$0xff] }
 0x470   : > { %1137 = vmatpush.bf16.msrb.mxu2 %v1535_v33 }
 0x4c9   : > { %v855_v36 = vpop.permute.xlu0 %854 }
 0x4ca   : > { %861 = vst.msk [vmem:[#allocation3] sm:$0xff] %vm860_vm12, %v855_v36 }
 0x4d1   : > { %v863_v38 = vld [vmem:[#allocation3] sm:$0xff] }
 0x4d9   : > { %v857_v37 = vpop.permute.xlu0 %856 }
 0x4da   : > { %862 = vst.msk [vmem:[#allocation3 + $0x8] sm:$0xff] %vm860_vm12, %v857_v37  ;;  %v1534_v37 = vld [vmem:[%s1802_s12 + $0x30] sm:$0xff] }
 0x4db   : > { %1138 = vmatpush.bf16.msrb.mxu2 %v1534_v37 }
 0x4e1   : > { %v864_v39 = vld [vmem:[#allocation3 + $0x8] sm:$0xff] }
 0x4e2   : > { %v865_v40 = vpack.c.bf16 %v864_v39, %v863_v38 }
 0x4e4   : > { %1461 = vmatmul.msk.bf16.vlgmr.msra.gmra.mxu0 %vm507_vm0, %v865_v40 }
 0x561   : > { %v894_v43 = vpop.f32.mrf.mxu0 }
 0x562   : > { %v899_v44 = vadd.f32 %v894_v43, %v1811_v2 }
 0x564   : > { %v1889_v45 = vadd.f32 %v901_v41, %v899_v44 }
 0x566   : > { %v904_v46 = vsel %vm507_vm0, %v1889_v45, 0.0 }
 0x567   : > { %905 = vadd.xlane.f32.xlu1 %v904_v46  ;;  %v1532_v46 = vld [vmem:[%s1802_s12 + $0x20] sm:$0xff] }
 0x569   : > { %v896_v47 = vpop.f32.mrf.mxu0 }
 0x56a   : > { %v900_v48 = vadd.f32 %v896_v47, %v1815_v4 }
 0x56c   : > { %v1894_v49 = vadd.f32 %v901_v41, %v900_v48  ;;  %v1533_v41 = vld [vmem:[%s1802_s12 + $0x28] sm:$0xff] }
 0x56d   : > { %1139 = vmatpush.bf16.msrb.mxu2 %v1533_v41 }
 0x56e   : > { %v907_v50 = vsel %vm507_vm0, %v1894_v49, 0.0 }
 0x56f   : > { %908 = vadd.xlane.f32.xlu0 %v907_v50 }
 0x571   : > { %1140 = vmatpush.bf16.msrb.mxu2 %v1532_v46 }
 0x5da   : > { %v906_v51 = vpop.xlane.xlu1 %905 }
 0x5db   : > { %v910_v2 = vmul.f32 %v906_v51, %v1819_v12 }
 0x5dd   : > { %v912_v52 = vsub.f32 %v1889_v45, %v910_v2  ;;  %v1531_v2 = vld [vmem:[%s1802_s12 + $0x18] sm:$0xff] }
 0x5de   : > { %1141 = vmatpush.bf16.msrb.mxu2 %v1531_v2 }
 0x5df   : > { %v914_v53 = vmul.f32 %v912_v52, %v912_v52 }
 0x5e1   : > { %v916_v54 = vsel %vm507_vm0, %v914_v53, 0.0 }
 0x5e2   : > { %917 = vadd.xlane.f32.xlu2 %v916_v54  ;;  %v909_v55 = vpop.xlane.xlu0 %908 }
 0x5e3   : > { %v911_v4 = vmul.f32 %v909_v55, %v1819_v12 }
 0x5e5   : > { %v913_v56 = vsub.f32 %v1894_v49, %v911_v4  ;;  %v1530_v4 = vld [vmem:[%s1802_s12 + $0x10] sm:$0xff] }
 0x5e6   : > { %1142 = vmatpush.bf16.msrb.mxu2 %v1530_v4 }
 0x5e7   : > { %v915_v57 = vmul.f32 %v913_v56, %v913_v56 }
 0x5e9   : > { %v919_v58 = vsel %vm507_vm0, %v915_v57, 0.0 }
 0x5ea   : > { %920 = vadd.xlane.f32.xlu2 %v919_v58 }
 0x655   : > { %v918_v60 = vpop.xlane.xlu2 %917 }
 0x656   : > { %v922_v61 = vmul.f32 %v918_v60, %v1819_v12 }
 0x658   : > { %v924_v0 = vadd.f32 1e-05, %v922_v61 }
 0x65a   : > { %1600 = vrsqrt.f32 %v924_v0  ;;  %vm932_vm14 = vweird.f32 %v924_v0 }
 0x65d   : > { %v921_v1 = vpop.xlane.xlu2 %920 }
 0x65e   : > { %v923_v3 = vmul.f32 %v921_v1, %v1819_v12 }
 0x660   : > { %v1601_v5 = vpop.eup %1600  ;;  %v925_v6 = vadd.f32 1e-05, %v923_v3 }
 0x661   : > { %v927_v8 = vmul.f32 %v1601_v5, %v924_v0  ;;  %vm933_vm13 = vweird.f32 %v1601_v5  ;;  %v1529_v0 = vld [vmem:[%s1802_s12 + $0x8] sm:$0xff] }
 0x662   : > { %1602 = vrsqrt.f32 %v925_v6  ;;  %vm934_vm15 = vmor %vm932_vm14, %vm933_vm13  ;;  %vm942_vm2 = vweird.f32 %v925_v6  ;;  %1143 = vmatpush.bf16.msrb.mxu2 %v1529_v0 }
 0x663   : > { %v928_v9 = vmul.f32 %v1601_v5, %v927_v8 }
 0x665   : > { %v929_v10 = vmul.f32 0.5, %v928_v9 }
 0x667   : > { %v930_v11 = vsub.f32 1.5, %v929_v10 }
 0x668   : > { %v1603_v13 = vpop.eup %1602 }
 0x669   : > { %v931_v7 = vmul.f32 %v1601_v5, %v930_v11  ;;  %v937_v14 = vmul.f32 %v1603_v13, %v925_v6  ;;  %vm943_vm1 = vweird.f32 %v1603_v13  ;;  %v1528_v11 = vld [vmem:[%s1802_s12] sm:$0xff] }
 0x66a   : > { %vm944_vm3 = vmor %vm942_vm2, %vm943_vm1  ;;  %1144 = vmatpush.bf16.msrb.mxu2 %v1528_v11 }
 0x66b   : > { %v938_v15 = vmul.f32 %v1603_v13, %v937_v14  ;;  %v935_v62 = vsel %vm934_vm15, %v1601_v5, %v931_v7 }
 0x66c   : > { %v946_v19 = vmul.f32 %v935_v62, %v912_v52 }
 0x66d   : > { %v939_v16 = vmul.f32 0.5, %v938_v15 }
 0x66e   : > { %v949_v23 = vmul.f32 %v948_v18, %v946_v19 }
 0x66f   : > { %v940_v17 = vsub.f32 1.5, %v939_v16 }
 0x670   : > { %v952_v26 = vadd.f32 %v951_v22, %v949_v23 }
 0x671   : > { %v941_v20 = vmul.f32 %v1603_v13, %v940_v17 }
 0x673   : > { %v945_v21 = vsel %vm944_vm3, %v1603_v13, %v941_v20 }
 0x674   : > { %v947_v24 = vmul.f32 %v945_v21, %v913_v56 }
 0x676   : > { %v950_v25 = vmul.f32 %v948_v18, %v947_v24 }
 0x678   : > { %v953_v27 = vadd.f32 %v951_v22, %v950_v25 }
 0x67a   : > { %v954_v28 = vpack.c.bf16 %v953_v27, %v952_v26 }
 0x67c   : > { %1470 = vmatmul.msk.bf16.vlgmr.msra.gmra.mxu1 %vm507_vm0, %v954_v28 }
 0x6f9   : > { %v987_v30 = vpop.f32.mrf.mxu1 }
 0x6fa   : > { %v1916_v31 = vadd.f32 %v1577_v29, %v987_v30 }
 0x6fc   : > { %v1919_v32 = vmul.f32 0.70710677, %v1916_v31  ;;  %v992_v2 = vmul.f32 0.5, %v1916_v31 }
 0x6fe   : > { %v996_v34 = vand.u32 2147483647, %v1919_v32  ;;  %vm1062_vm12 = vcmp.ge.f32.partialorder %v1919_v32, 0.0 }
 0x700   : > { %v998_v35 = vmul.f32 0.3275911, %v996_v34  ;;  %v1050_v60 = vsub.f32 0.0, %v996_v34 }
 0x701   : > { %v989_v36 = vpop.f32.mrf.mxu1 }
 0x702   : > { %v1000_v38 = vadd.f32 1.0, %v998_v35  ;;  %v1924_v39 = vadd.f32 %v1577_v29, %v989_v36  ;;  %v1052_v6 = vmul.f32 %v1050_v60, %v996_v34 }
 0x704   : > { %1604 = vrcp.f32 %v1000_v38  ;;  %v1927_v40 = vmul.f32 0.70710677, %v1924_v39  ;;  %v1013_v52 = vand.u32 2147483648, %v1000_v38  ;;  %v1011_v54 = vand.u32 2147483647, %v1000_v38 }
 0x705   : > { %vm1007_vm5 = vweird.f32 %v1000_v38  ;;  %v1054_v15 = vmul.f32 1.442695, %v1052_v6 }
 0x706   : > { %v997_v43 = vand.u32 2147483647, %v1927_v40  ;;  %v1014_v56 = vor.u32 1.1754944e-38, %v1013_v52  ;;  %vm1012_vm7 = vcmp.eq.f32.partialorder %v1011_v54, 8.507059e+37  ;;  %vm1063_vm13 = vcmp.ge.f32.partialorder %v1927_v40, 0.0 }
 0x707   : > { %v993_v52 = vmul.f32 0.5, %v1924_v39 }
 0x708   : > { %v999_v44 = vmul.f32 0.3275911, %v997_v43  ;;  %v1051_v18 = vsub.f32 0.0, %v997_v43 }
 0x70a   : > { %v1605_v47 = vpop.eup %1604  ;;  %v1001_v50 = vadd.f32 1.0, %v999_v44  ;;  %v1053_v23 = vmul.f32 %v1051_v18, %v997_v43 }
 0x70b   : > { %v1003_v48 = vmul.f32 %v1605_v47, %v1000_v38  ;;  %vm1008_vm4 = vweird.f32 %v1605_v47 }
 0x70c   : > { %1606 = vrcp.f32 %v1001_v50  ;;  %vm1009_vm6 = vmor %vm1007_vm5, %vm1008_vm4  ;;  %v1028_v5 = vand.u32 2147483648, %v1001_v50  ;;  %v1026_v9 = vand.u32 2147483647, %v1001_v50  ;;  %vm1022_vm9 = vweird.f32 %v1001_v50 }
 0x70d   : > { %v1004_v51 = vsub.f32 1.0, %v1003_v48  ;;  %1608 = vpow2.f32 %v1054_v15  ;;  %v1056_v28 = vmul.f32 1.442695, %v1053_v23 }
 0x70e   : > { %v1029_v14 = vor.u32 1.1754944e-38, %v1028_v5  ;;  %vm1027_vm11 = vcmp.eq.f32.partialorder %v1026_v9, 8.507059e+37 }
 0x70f   : > { %v1005_v53 = vmul.f32 %v1605_v47, %v1004_v51  ;;  %1610 = vpow2.f32 %v1056_v28 }
 0x711   : > { %v1006_v55 = vadd.f32 %v1605_v47, %v1005_v53 }
 0x712   : > { %v1607_v57 = vpop.eup %1606 }
 0x713   : > { %v1010_v58 = vsel %vm1009_vm6, %v1605_v47, %v1006_v55  ;;  %v1018_v61 = vmul.f32 %v1607_v57, %v1001_v50  ;;  %vm1023_vm8 = vweird.f32 %v1607_v57  ;;  %v1609_v29 = vpop.eup %1608 }
 0x714   : > { %v1015_v59 = vsel %vm1012_vm7, %v1014_v56, %v1010_v58  ;;  %vm1024_vm10 = vmor %vm1022_vm9, %vm1023_vm8  ;;  %v1153_v56 = vperm.slane %v1832_v42, 5 }
 0x715   : > { %v1032_v63 = vmul.f32 1.0614054, %v1015_v59  ;;  %v1019_v1 = vsub.f32 1.0, %v1018_v61  ;;  %v1611_v44 = vpop.eup %1610 }
 0x717   : > { %v1034_v3 = vadd.f32 -1.4531521, %v1032_v63  ;;  %v1020_v8 = vmul.f32 %v1607_v57, %v1019_v1 }
 0x719   : > { %v1036_v10 = vmul.f32 %v1034_v3, %v1015_v59  ;;  %v1021_v13 = vadd.f32 %v1607_v57, %v1020_v8 }
 0x71b   : > { %v1038_v7 = vadd.f32 1.4214138, %v1036_v10  ;;  %v1025_v62 = vsel %vm1024_vm10, %v1607_v57, %v1021_v13 }
 0x71c   : > { %v1030_v17 = vsel %vm1027_vm11, %v1029_v14, %v1025_v62 }
 0x71d   : > { %v1040_v16 = vmul.f32 %v1038_v7, %v1015_v59  ;;  %v1033_v19 = vmul.f32 1.0614054, %v1030_v17 }
 0x71f   : > { %v1042_v20 = vadd.f32 -0.28449672, %v1040_v16  ;;  %v1035_v21 = vadd.f32 -1.4531521, %v1033_v19 }
 0x721   : > { %v1044_v22 = vmul.f32 %v1042_v20, %v1015_v59  ;;  %v1037_v24 = vmul.f32 %v1035_v21, %v1030_v17 }
 0x723   : > { %v1046_v25 = vadd.f32 0.2548296, %v1044_v22  ;;  %v1039_v26 = vadd.f32 1.4214138, %v1037_v24 }
 0x725   : > { %v1048_v27 = vmul.f32 %v1046_v25, %v1015_v59  ;;  %v1041_v30 = vmul.f32 %v1039_v26, %v1030_v17 }
 0x727   : > { %v1058_v33 = vmul.f32 %v1609_v29, %v1048_v27  ;;  %v1043_v34 = vadd.f32 -0.28449672, %v1041_v30 }
 0x729   : > { %v1060_v35 = vsub.f32 1.0, %v1058_v33  ;;  %v1045_v36 = vmul.f32 %v1043_v34, %v1030_v17 }
 0x72b   : > { %v1047_v37 = vadd.f32 0.2548296, %v1045_v36  ;;  %v1064_v38 = vsub.f32 0.0, %v1060_v35 }
 0x72d   : > { %v1049_v41 = vmul.f32 %v1047_v37, %v1030_v17  ;;  %v1066_v43 = vsel %vm1062_vm12, %v1060_v35, %v1064_v38 }
 0x72e   : > { %v1068_v50 = vadd.f32 1.0, %v1066_v43 }
 0x72f   : > { %v1059_v46 = vmul.f32 %v1611_v44, %v1049_v41 }
 0x730   : > { %v1070_v54 = vmul.f32 %v1068_v50, %v992_v2 }
 0x731   : > { %v1061_v47 = vsub.f32 1.0, %v1059_v46 }
 0x733   : > { %v1065_v48 = vsub.f32 0.0, %v1061_v47 }
 0x735   : > { %v1067_v51 = vsel %vm1063_vm13, %v1061_v47, %v1065_v48 }
 0x736   : > { %v1069_v53 = vadd.f32 1.0, %v1067_v51 }
 0x738   : > { %v1071_v55 = vmul.f32 %v1069_v53, %v993_v52 }
 0x73a   : > { %v1072_v4 = vpack.c.bf16 %v1071_v55, %v1070_v54 }
 0x73c   : > { %1145 = vmatmul.bf16.vlgmr.msrb.gmra.mxu2 %v1072_v4 }
 0x7bf   : > { %v1146_v57 = vpop.f32.mrf.mxu2 }
 0x7c0   : > { %v1151_v32 = vadd.f32 %v1146_v57, %v1889_v45 }
 0x7c2   : > { %v1154_v58 = vadd.f32 %v1153_v56, %v1151_v32 }
 0x7c4   : > { %1156 = vst.msk [vmem:[#allocation2] sm:$0xff] %vm507_vm0, %v1154_v58 }
 0x7c7   : > { %v1148_v59 = vpop.f32.mrf.mxu2 }
 0x7c8   : > { %v1152_v40 = vadd.f32 %v1148_v59, %v1894_v49  ;;  %1161 = sbr.rel (%p1503_p6) target bundleno = 2422 (0x976), region = 87 }
 0x7ca   : > { %v1155_v60 = vadd.f32 %v1153_v56, %v1152_v40 }
 0x7cc   : > { %1157 = vst.msk [vmem:[#allocation2 + $0x8] sm:$0xff] %vm507_vm0, %v1155_v60 }
 0x7cd   : > { %v1165_v31 = vrot.slane %v1155_v60, 7  ;;  %vm1172_vm14 = vcmask 253952   ;;  %vm1168_vm15 = vcmask 261127   ;;  %v1537_v11 = vld [vmem:[%s1986_s9 + $0x8] sm:$0xff]  ;;  %v1536_v14 = vld [vmem:[%s1986_s9] sm:$0xff]  ;;  %vm1251_vm7 = vcmask 1041409  }
 0x7ce   : > { %v1169_v42 = vsel %vm1168_vm15, %v1154_v58, 0.0  ;;  %1275 = vmatpush.bf16.msra.mxu0 %v1537_v11  ;;  %v1162_v26 = vld [vmem:[%s1985_s8] sm:$0x3] }
 0x7cf   : > { %v1173_v39 = vsel %vm1172_vm14, %v1165_v31, 0.0  ;;  %v1229_v29 = vperm.slane %v1162_v26, 0  ;;  %v1232_v34 = vperm.slane %v1162_v26, 1  ;;  %v1612_v55 = vld [vmem:[%s1987_s10] ss:$0 sm:$0xff] }
 0x7d0   : > { %1174 = vadd.xlane.f32.xlu0 %v1173_v39 }
 0x7d2   : > { %1276 = vmatpush.bf16.msra.mxu0 %v1536_v14 }
 0x7d8   : > { %1170 = vadd.xlane.f32.xlu0 %v1169_v42 }
 0x843   : > { %v1175_v45 = vpop.xlane.xlu0 %1174 }
 0x844   : > { %v1177_v61 = vmul.f32 %v1175_v45, %v1819_v12 }
 0x846   : > { %v1180_v63 = vrot.slane %v1177_v61, 1 }
 0x848   : > { %v1184_v0 = vsub.f32 %v1155_v60, %v1180_v63 }
 0x84a   : > { %v1186_v1 = vmul.f32 %v1184_v0, %v1184_v0 }
 0x84b   : > { %v1171_v49 = vpop.xlane.xlu0 %1170 }
 0x84c   : > { %v1189_v3 = vrot.slane %v1186_v1, 7  ;;  %v1176_v5 = vmul.f32 %v1171_v49, %v1819_v12 }
 0x84e   : > { %v1195_v6 = vsel %vm1172_vm14, %v1189_v3, 0.0  ;;  %v1183_v8 = vsub.f32 %v1154_v58, %v1176_v5 }
 0x84f   : > { %1196 = vadd.xlane.f32.xlu1 %v1195_v6 }
 0x850   : > { %v1185_v9 = vmul.f32 %v1183_v8, %v1183_v8 }
 0x852   : > { %v1192_v10 = vsel %vm1168_vm15, %v1185_v9, 0.0 }
 0x857   : > { %1193 = vadd.xlane.f32.xlu1 %v1192_v10 }
 0x8c2   : > { %v1197_v13 = vpop.xlane.xlu1 %1196 }
 0x8c3   : > { %v1199_v7 = vmul.f32 %v1197_v13, %v1819_v12 }
 0x8c5   : > { %v1201_v15 = vadd.f32 1e-05, %v1199_v7 }
 0x8c7   : > { %1613 = vrsqrt.f32 %v1201_v15  ;;  %vm1218_vm2 = vweird.f32 %v1201_v15 }
 0x8ca   : > { %v1194_v62 = vpop.xlane.xlu1 %1193 }
 0x8cb   : > { %v1198_v16 = vmul.f32 %v1194_v62, %v1819_v12 }
 0x8cd   : > { %v1614_v17 = vpop.eup %1613  ;;  %v1200_v18 = vadd.f32 1e-05, %v1198_v16 }
 0x8ce   : > { %v1213_v19 = vmul.f32 %v1614_v17, %v1201_v15  ;;  %vm1219_vm1 = vweird.f32 %v1614_v17 }
 0x8cf   : > { %1615 = vrsqrt.f32 %v1200_v18  ;;  %vm1220_vm3 = vmor %vm1218_vm2, %vm1219_vm1  ;;  %vm1208_vm5 = vweird.f32 %v1200_v18 }
 0x8d0   : > { %v1214_v20 = vmul.f32 %v1614_v17, %v1213_v19 }
 0x8d2   : > { %v1215_v21 = vmul.f32 0.5, %v1214_v20 }
 0x8d4   : > { %v1216_v22 = vsub.f32 1.5, %v1215_v21 }
 0x8d5   : > { %v1616_v23 = vpop.eup %1615 }
 0x8d6   : > { %v1217_v24 = vmul.f32 %v1614_v17, %v1216_v22  ;;  %v1203_v25 = vmul.f32 %v1616_v23, %v1200_v18  ;;  %vm1209_vm4 = vweird.f32 %v1616_v23 }
 0x8d7   : > { %vm1210_vm6 = vmor %vm1208_vm5, %vm1209_vm4 }
 0x8d8   : > { %v1221_v27 = vsel %vm1220_vm3, %v1614_v17, %v1217_v24  ;;  %v1204_v28 = vmul.f32 %v1616_v23, %v1203_v25 }
 0x8d9   : > { %v1224_v12 = vrot.slane %v1221_v27, 1 }
 0x8da   : > { %v1205_v30 = vmul.f32 0.5, %v1204_v28 }
 0x8db   : > { %v1228_v33 = vmul.f32 %v1224_v12, %v1184_v0 }
 0x8dc   : > { %v1206_v35 = vsub.f32 1.5, %v1205_v30 }
 0x8dd   : > { %v1231_v36 = vmul.f32 %v1229_v29, %v1228_v33 }
 0x8de   : > { %v1207_v37 = vmul.f32 %v1616_v23, %v1206_v35 }
 0x8df   : > { %v1234_v38 = vadd.f32 %v1232_v34, %v1231_v36 }
 0x8e0   : > { %v1211_v41 = vsel %vm1210_vm6, %v1616_v23, %v1207_v37 }
 0x8e1   : > { %v1227_v44 = vmul.f32 %v1211_v41, %v1183_v8  ;;  %v1236_v43 = vpack.c.bf16 %v1234_v38, %v1234_v38 }
 0x8e3   : > { %v1230_v46 = vmul.f32 %v1229_v29, %v1227_v44  ;;  %v1248_v50 = vunpack.c.l.b16 %v1236_v43 }
 0x8e5   : > { %v1233_v47 = vadd.f32 %v1232_v34, %v1230_v46  ;;  %v1250_v52 = vrot.slane %v1248_v50, 6 }
 0x8e7   : > { %v1235_v48 = vpack.c.bf16 %v1233_v47, %v1233_v47 }
 0x8e9   : > { %v1247_v51 = vunpack.c.l.b16 %v1235_v48 }
 0x8eb   : > { %v1249_v2 = vrot.slane %v1247_v51, 7 }
 0x8ed   : > { %v1252_v53 = vsel %vm1251_vm7, %v1250_v52, %v1249_v2 }
 0x8ee   : > { %v1253_v54 = vpack.c.b16 %v1252_v53, %v1252_v53 }
 0x8f0   : > { %1512 = vmatmul.msk.bf16.vlgmr.msra.gmra.mxu0 %vm507_vm0, %v1253_v54 }
 0x96d   : > { %v1278_v4 = vpop.f32.mrf.mxu0 }
 0x96e   : > { %v1279_v56 = vadd.f32 %v1612_v55, %v1278_v4 }
 0x970   : > { %1282 = vst [vmem:[#allocation5] sm:$0x3] %v1279_v56 }
 0x975   : > { %v1280_v57 = vpop.f32.mrf.mxu0 }
 0x976 PF: > { %s1996_s18 = sadd.s32 4294967295, %s1673_s19   ;;  %s1293_s2 = sshll.u32 %s1988_s11, 4  ;;  %s1294_s2 = int_to_ptr.hbm [resolvable:$true] %s1293_s2 }
 0x977   : > { %p1542_p7 = scmp.eq.s32.totalorder %s1996_s18, 1  ;;  %s1682_s24 = smov [#allocation5]  }
 0x978   : > { %s1291_s27 = sshll.u32 %s1682_s24, 4  ;;  %s1292_s27 = int_to_ptr.vmem [resolvable:$true] %s1291_s27 }
 0x979   : > { %1539 = dma.vmem_to_hbm [thread:$0]  (%p1542_p7), %s1292_s27, 32, %s1294_s2, [#allocation6]  }
 0x97a   : > { %1660 = dma.done.wait (%p1542_p7), [#allocation6], 32  }
 0x97b   : > { %1662 = vsyncadd (%p1542_p7), [#allocation6], 4294967264 }
 0x97c PF: > { %s22_s19 = sadd.s32 1, %s1673_s19   ;;  %s1997_s17 = sld [smem:[#allocation10_spill]] }
 0x97d   : > { %p19_p8 = scmp.ge.s32.totalorder %s22_s19, 4   ;;  %s1998_s18 = sld [smem:[#allocation11_spill]] }
 0x97f   :  { %21 = sbr.rel (!%p19_p8) target bundleno = 5 (0x5), region = 138 }
 0x984   :  { %1307 = vsyncpa [#allocation6], 1 }
 0x985   :  { %1309 = vsyncpa [#allocation6 + $0x1], 1 }
 0x986   :  { %1310 = vsyncmov [#allocation4] }
 0x989   :  { %s1311_s30 = vpop.sfrf %1310 }
 0x98a   :  { %p1517_p9 = scmp.ne.s32.totalorder %s1311_s30, 0 }
 0x98c   :  { %1315 = shalt.err (%p1517_p9)  }

</bundles_post_ra>
